<compile_context>
chip_gen: v5e
topology: v5e:2x2
jax: 0.10.0
libtpu: 0.0.40
codegen_flags: <defaults>
</compile_context>

<pallas_src>
import functools

import jax
import jax.numpy as jnp
from jax.experimental import pallas as pl
from jax.experimental.pallas import tpu as pltpu


def _sru_kernel(x_ref, gw_ref, gb_ref, slope_ref, o_ref, rew_ref, *,
                NB, C, H, W, G, eps):
    """Processes NB batch elements per grid step.

    x_ref     : (NB, C, H, W) VMEM input block (I/O dtype; math is f32)
    gw_ref    : (C,)  SMEM   gn_weight * w_gamma (folded per-channel scale)
    gb_ref    : (C,)  SMEM   gn_bias   * w_gamma (folded per-channel bias)
    slope_ref : (1, W) VMEM  0.5 * LearnableSigmoid slope (frequency == W axis)
    o_ref     : (NB, C, H, W) VMEM output block (I/O dtype)
    rew_ref   : (C, H, W) f32 VMEM scratch holding the reweigts planes
    """
    Cg = C // G
    cg4 = C // 4
    inv_denom = 1.0 / float(Cg * H * W)

    # Hoist the (1, W) -> (H, W) sublane broadcast: JAX does not CSE
    # broadcast_in_dim, so doing this inside the channel loops would emit it
    # NB*C times per grid step.
    slope_hw = jnp.broadcast_to(slope_ref[...].astype(jnp.float32), (H, W))

    # NB is bounded by the VMEM budget (small), so a static unroll is fine;
    # per-nb live state is bounded because rew planes live in VMEM scratch and
    # the per-channel affine is consumed immediately inside the group loop.
    for nb in range(NB):
        # ---- GroupNorm stats: two-pass, streamed per channel plane ---------
        for g in range(G):
            c0 = g * Cg
            s = jnp.zeros((1, 1), jnp.float32)
            for c in range(c0, c0 + Cg):
                s = s + jnp.sum(x_ref[nb, c].astype(jnp.float32), keepdims=True)
            m = s * inv_denom                                    # (1,1) mean

            v = jnp.zeros((1, 1), jnp.float32)
            for c in range(c0, c0 + Cg):
                d = x_ref[nb, c].astype(jnp.float32) - m
                v = v + jnp.sum(d * d, keepdims=True)
            r = jax.lax.rsqrt(v * inv_denom + eps)               # (1,1) inv std

            # reweigts[c] = 2*sigmoid(slope * x1[c]) = 1 + tanh(0.5*slope*x1[c])
            # with folded affine x1[c] = x[c]*A + B;  A/B never persist past
            # this loop (no per-channel lists kept live).
            for c in range(c0, c0 + Cg):
                A = r * gw_ref[c]                                # (1,1)
                B = gb_ref[c] - m * A                            # (1,1)
                xc = x_ref[nb, c].astype(jnp.float32)            # (H,W)
                rew_ref[c] = 1.0 + jnp.tanh(slope_hw * (xc * A + B))

        # ---- y = reweigts*x + shuffle_channels(flip(reweigts, ch)*x, 4) ----
        # Channel flip + channel shuffle folded into static channel indices.
        for i in range(C):
            src = (i % 4) * cg4 + (i // 4)       # shuffle_channels(groups=4) source
            xi = x_ref[nb, i].astype(jnp.float32)
            xsrc = x_ref[nb, src].astype(jnp.float32)
            y = rew_ref[i] * xi + rew_ref[C - 1 - src] * xsrc
            o_ref[nb, i] = y.astype(o_ref.dtype)


def _pick_batch_block(N, per_n_bytes, *, scratch_bytes=0,
                      target_bytes=8 << 20, vmem_budget=44 << 20):
    """Batch-block size NB.

    Constraints: (a) double-buffered in+out (4 * NB * per_n) + scratch fits a
    v7x-safe VMEM budget, (b) block stays near target_bytes (multi-MiB blocks
    reach ~85%+ of HBM roofline), (c) the grid keeps >= 2 (ideally >= 4) steps
    so v7x's two TensorCores are both used and the DMA pipeline can overlap.
    Non-divisor N is handled by the caller via grid = cdiv(N, NB).
    """
    nb_vmem = max(1, (vmem_budget - scratch_bytes) // (4 * max(per_n_bytes, 1)))
    nb_target = max(1, target_bytes // max(per_n_bytes, 1))
    nb_grid = pl.cdiv(N, min(N, 4)) if N > 1 else 1
    return int(max(1, min(N, nb_vmem, nb_target, nb_grid)))


def sru_forward(x, gn_weight, gn_bias, slope, *, group_num, eps=1e-5,
                io_dtype=None):
    """SRU.forward.

    x: (N, C, H, W), gn_weight/gn_bias: (C,), slope: (W, 1).
    io_dtype: HBM dtype at the pallas_call boundary (e.g. jnp.bfloat16 to
    halve HBM traffic on this bandwidth-bound kernel); internal math is f32.
    """
    N, C, H, W = x.shape
    assert C % group_num == 0 and C >= group_num and C % 4 == 0
    assert slope.shape[0] == W   # LearnableSigmoid slope indexes the W (fre) axis

    io_dtype = jnp.dtype(x.dtype) if io_dtype is None else jnp.dtype(io_dtype)
    x_io = x.astype(io_dtype)

    # Tiny parameter glue stays in plain JAX (folded per-channel scale/bias).
    w_gamma = gn_weight / jnp.sum(gn_weight)
    gw = (gn_weight * w_gamma).astype(jnp.float32)              # (C,)
    gb = (gn_bias * w_gamma).astype(jnp.float32)                # (C,)
    half_slope = (0.5 * slope.reshape(1, W)).astype(jnp.float32)

    itemsize = io_dtype.itemsize
    per_n_bytes = C * H * W * itemsize
    rew_bytes = C * H * W * 4                                   # f32 scratch
    NB = _pick_batch_block(N, per_n_bytes, scratch_bytes=rew_bytes)
    grid_n = pl.cdiv(N, NB)                                     # partial last block OK

    block_bytes = NB * per_n_bytes
    # 2x double-buffered input + 2x output + scratch + margin; capped for
    # v7x's 64 MiB/TC VMEM, floored at the common 32 MiB scoped default.
    vmem_limit = int(min(48 << 20,
                         max(32 << 20, 4 * block_bytes + rew_bytes + (2 << 20))))

    kernel = functools.partial(_sru_kernel, NB=NB, C=C, H=H, W=W,
                               G=group_num, eps=eps)

    nelem = N * C * H * W
    cost = pl.CostEstimate(
        flops=12 * nelem,
        transcendentals=nelem,
        bytes_accessed=2 * nelem * itemsize,
    )

    return pl.pallas_call(
        kernel,
        out_shape=jax.ShapeDtypeStruct((N, C, H, W), io_dtype),
        grid_spec=pltpu.PrefetchScalarGridSpec(
            num_scalar_prefetch=0,
            grid=(grid_n,),
            in_specs=[
                pl.BlockSpec((NB, C, H, W), lambda n: (n, 0, 0, 0)),
                pl.BlockSpec(memory_space=pltpu.MemorySpace.SMEM),
                pl.BlockSpec(memory_space=pltpu.MemorySpace.SMEM),
                pl.BlockSpec((1, W), lambda n: (0, 0)),
            ],
            out_specs=pl.BlockSpec((NB, C, H, W), lambda n: (n, 0, 0, 0)),
            scratch_shapes=[pltpu.VMEM((C, H, W), jnp.float32)],
        ),
        compiler_params=pltpu.CompilerParams(
            dimension_semantics=("parallel",),
            vmem_limit_bytes=vmem_limit),
        cost_estimate=cost,
    )(x_io, gw, gb, half_slope)


def sru_reference(x, gn_weight, gn_bias, slope, *, group_num, eps=1e-5):
    """Pure-JAX reference reproducing the PyTorch forward pass exactly."""
    N, C, H, W = x.shape
    xr = x.reshape(N, group_num, -1)
    mean = xr.mean(axis=2, keepdims=True)
    var = ((xr - mean) ** 2).mean(axis=2, keepdims=True)        # biased (GroupNorm)
    xn = ((xr - mean) / jnp.sqrt(var + eps)).reshape(N, C, H, W)
    gn_x = xn * gn_weight.reshape(1, C, 1, 1) + gn_bias.reshape(1, C, 1, 1)
    w_gamma = (gn_weight / jnp.sum(gn_weight)).reshape(1, C, 1, 1)
    x1 = gn_x * w_gamma
    # lsigmoid applied on x1.permute(0,1,3,2) then permuted back -> slope on W axis.
    reweigts = 2.0 * jax.nn.sigmoid(slope.reshape(1, 1, 1, W) * x1)
    f_reweigts = jnp.flip(reweigts, axis=1)
    x_1 = reweigts * x
    x_2 = f_reweigts * x
    cg4 = C // 4
    y2 = x_2.reshape(N, 4, cg4, H, W).transpose(0, 2, 1, 3, 4).reshape(N, C, H, W)
    return x_1 + y2


if __name__ == "__main__":
    # Small shapes consistent with the module: oup_channels=8, group_num=4,
    # fre == W == 128 (slope broadcasts along the W/frequency axis).
    N, C, H, W = 2, 8, 16, 128
    GROUP_NUM = 4

    key = jax.random.PRNGKey(0)
    kx, kw, kb, ks = jax.random.split(key, 4)

    x = jax.random.normal(kx, (N, C, H, W), dtype=jnp.float32)
    # Deterministic synthetic parameters (GroupNorm affine + LearnableSigmoid slope).
    gn_weight = 1.0 + 0.1 * jax.random.normal(kw, (C,), dtype=jnp.float32)
    gn_bias = 0.1 * jax.random.normal(kb, (C,), dtype=jnp.float32)
    slope = 1.0 + 0.1 * jax.random.normal(ks, (W, 1), dtype=jnp.float32)

    y_ref = sru_reference(x, gn_weight, gn_bias, slope, group_num=GROUP_NUM)

    # f32-I/O path: bit-level faithful to the module; tight tolerance.
    y_f32 = jax.block_until_ready(
        sru_forward(x, gn_weight, gn_bias, slope, group_num=GROUP_NUM))
    assert y_f32.shape == (N, C, H, W) and y_f32.dtype == x.dtype
    assert jnp.allclose(y_f32, y_ref, rtol=1e-4, atol=1e-4), (
        float(jnp.max(jnp.abs(y_f32 - y_ref))))

    # bf16-I/O path (the HBM-bandwidth win): bf16 at the boundary, f32 math inside.
    y_bf16 = jax.block_until_ready(
        sru_forward(x, gn_weight, gn_bias, slope, group_num=GROUP_NUM,
                    io_dtype=jnp.bfloat16))
    assert y_bf16.shape == (N, C, H, W) and y_bf16.dtype == jnp.bfloat16
    err = jnp.max(jnp.abs(y_bf16.astype(jnp.float32) - y_ref))
    assert jnp.allclose(y_bf16.astype(jnp.float32), y_ref,
                        rtol=5e-2, atol=1e-1), float(err)

    print("KERNEL_OK")
</pallas_src>

<mosaic_0001>
module attributes {stable_mosaic.version = 11 : i64} {
  func.func @_sru_kernel(%arg0: i32, %arg1: memref<1x8x16x128xf32, #tpu.memory_space<vmem>>, %arg2: memref<8xf32, #tpu.memory_space<smem>>, %arg3: memref<8xf32, #tpu.memory_space<smem>>, %arg4: memref<1x128xf32, #tpu.memory_space<vmem>>, %arg5: memref<1x8x16x128xf32, #tpu.memory_space<vmem>>, %arg6: memref<8x16x128xf32, #tpu.memory_space<vmem>>) attributes {dimension_semantics = [#tpu.dimension_semantics<parallel>], iteration_bounds = array<i64: 2>, scalar_prefetch = 0 : i64, scratch_operands = 1 : i64, tpu.core_type = #tpu.core_type<tc>, window_params = [{transform_indices = @transform_0, window_bounds = array<i64: 1, 8, 16, 128>}, {transform_indices = @transform_1, window_bounds = array<i64: 8>}, {transform_indices = @transform_2, window_bounds = array<i64: 8>}, {pipeline_mode = #tpu.pipeline_mode<synchronous>, transform_indices = @transform_3, window_bounds = array<i64: 1, 128>}, {transform_indices = @transform_4, window_bounds = array<i64: 1, 8, 16, 128>}]} {
    %c0 = arith.constant 0 : index
    %c0_0 = arith.constant 0 : index
    %0 = vector.load %arg4[%c0, %c0_0] : memref<1x128xf32, #tpu.memory_space<vmem>>, vector<1x128xf32>
    %1 = vector.shape_cast %0 : vector<1x128xf32> to vector<1x128xf32>
    %2 = vector.broadcast %1 : vector<1x128xf32> to vector<16x128xf32>
    %cst = arith.constant 0.000000e+00 : f32
    %3 = vector.broadcast %cst : f32 to vector<1x1xf32>
    %c0_1 = arith.constant 0 : index
    %c0_2 = arith.constant 0 : index
    %c0_3 = arith.constant 0 : index
    %c0_4 = arith.constant 0 : index
    %4 = vector.load %arg1[%c0_1, %c0_2, %c0_3, %c0_4] : memref<1x8x16x128xf32, #tpu.memory_space<vmem>>, vector<1x1x16x128xf32>
    %5 = vector.shape_cast %4 : vector<1x1x16x128xf32> to vector<16x128xf32>
    %6 = vector.shape_cast %5 : vector<16x128xf32> to vector<1x16x128xf32>
    %cst_5 = arith.constant dense<0.000000e+00> : vector<1xf32>
    %7 = vector.multi_reduction <add>, %6, %cst_5 [1, 2] : vector<1x16x128xf32> to vector<1xf32>
    %8 = vector.shape_cast %7 : vector<1xf32> to vector<1x1x1xf32>
    %9 = vector.extract %8[0, 0, 0] : f32 from vector<1x1x1xf32>
    %10 = vector.broadcast %9 : f32 to vector<1x1xf32>
    %11 = arith.addf %3, %10 : vector<1x1xf32>
    %c0_6 = arith.constant 0 : index
    %c1 = arith.constant 1 : index
    %c0_7 = arith.constant 0 : index
    %c0_8 = arith.constant 0 : index
    %12 = vector.load %arg1[%c0_6, %c1, %c0_7, %c0_8] : memref<1x8x16x128xf32, #tpu.memory_space<vmem>>, vector<1x1x16x128xf32>
    %13 = vector.shape_cast %12 : vector<1x1x16x128xf32> to vector<16x128xf32>
    %14 = vector.shape_cast %13 : vector<16x128xf32> to vector<1x16x128xf32>
    %cst_9 = arith.constant dense<0.000000e+00> : vector<1xf32>
    %15 = vector.multi_reduction <add>, %14, %cst_9 [1, 2] : vector<1x16x128xf32> to vector<1xf32>
    %16 = vector.shape_cast %15 : vector<1xf32> to vector<1x1x1xf32>
    %17 = vector.extract %16[0, 0, 0] : f32 from vector<1x1x1xf32>
    %18 = vector.broadcast %17 : f32 to vector<1x1xf32>
    %19 = arith.addf %11, %18 : vector<1x1xf32>
    %cst_10 = arith.constant 2.44140625E-4 : f32
    %20 = vector.broadcast %cst_10 : f32 to vector<1x1xf32>
    %21 = arith.mulf %19, %20 : vector<1x1xf32>
    %cst_11 = arith.constant 0.000000e+00 : f32
    %22 = vector.broadcast %cst_11 : f32 to vector<1x1xf32>
    %c0_12 = arith.constant 0 : index
    %c0_13 = arith.constant 0 : index
    %c0_14 = arith.constant 0 : index
    %c0_15 = arith.constant 0 : index
    %23 = vector.load %arg1[%c0_12, %c0_13, %c0_14, %c0_15] : memref<1x8x16x128xf32, #tpu.memory_space<vmem>>, vector<1x1x16x128xf32>
    %24 = vector.shape_cast %23 : vector<1x1x16x128xf32> to vector<16x128xf32>
    %25 = vector.broadcast %21 : vector<1x1xf32> to vector<16x128xf32>
    %26 = arith.subf %24, %25 : vector<16x128xf32>
    %27 = arith.mulf %26, %26 : vector<16x128xf32>
    %28 = vector.shape_cast %27 : vector<16x128xf32> to vector<1x16x128xf32>
    %cst_16 = arith.constant dense<0.000000e+00> : vector<1xf32>
    %29 = vector.multi_reduction <add>, %28, %cst_16 [1, 2] : vector<1x16x128xf32> to vector<1xf32>
    %30 = vector.shape_cast %29 : vector<1xf32> to vector<1x1x1xf32>
    %31 = vector.extract %30[0, 0, 0] : f32 from vector<1x1x1xf32>
    %32 = vector.broadcast %31 : f32 to vector<1x1xf32>
    %33 = arith.addf %22, %32 : vector<1x1xf32>
    %c0_17 = arith.constant 0 : index
    %c1_18 = arith.constant 1 : index
    %c0_19 = arith.constant 0 : index
    %c0_20 = arith.constant 0 : index
    %34 = vector.load %arg1[%c0_17, %c1_18, %c0_19, %c0_20] : memref<1x8x16x128xf32, #tpu.memory_space<vmem>>, vector<1x1x16x128xf32>
    %35 = vector.shape_cast %34 : vector<1x1x16x128xf32> to vector<16x128xf32>
    %36 = vector.broadcast %21 : vector<1x1xf32> to vector<16x128xf32>
    %37 = arith.subf %35, %36 : vector<16x128xf32>
    %38 = arith.mulf %37, %37 : vector<16x128xf32>
    %39 = vector.shape_cast %38 : vector<16x128xf32> to vector<1x16x128xf32>
    %cst_21 = arith.constant dense<0.000000e+00> : vector<1xf32>
    %40 = vector.multi_reduction <add>, %39, %cst_21 [1, 2] : vector<1x16x128xf32> to vector<1xf32>
    %41 = vector.shape_cast %40 : vector<1xf32> to vector<1x1x1xf32>
    %42 = vector.extract %41[0, 0, 0] : f32 from vector<1x1x1xf32>
    %43 = vector.broadcast %42 : f32 to vector<1x1xf32>
    %44 = arith.addf %33, %43 : vector<1x1xf32>
    %cst_22 = arith.constant 2.44140625E-4 : f32
    %45 = vector.broadcast %cst_22 : f32 to vector<1x1xf32>
    %46 = arith.mulf %44, %45 : vector<1x1xf32>
    %cst_23 = arith.constant 9.99999974E-6 : f32
    %47 = vector.broadcast %cst_23 : f32 to vector<1x1xf32>
    %48 = arith.addf %46, %47 : vector<1x1xf32>
    %49 = math.rsqrt %48 : vector<1x1xf32>
    %c0_24 = arith.constant 0 : index
    %50 = memref.load %arg2[%c0_24] : memref<8xf32, #tpu.memory_space<smem>>
    %51 = vector.broadcast %50 : f32 to vector<1x1xf32>
    %52 = arith.mulf %49, %51 : vector<1x1xf32>
    %c0_25 = arith.constant 0 : index
    %53 = memref.load %arg3[%c0_25] : memref<8xf32, #tpu.memory_space<smem>>
    %54 = arith.mulf %21, %52 : vector<1x1xf32>
    %55 = vector.broadcast %53 : f32 to vector<1x1xf32>
    %56 = arith.subf %55, %54 : vector<1x1xf32>
    %c0_26 = arith.constant 0 : index
    %c0_27 = arith.constant 0 : index
    %c0_28 = arith.constant 0 : index
    %c0_29 = arith.constant 0 : index
    %57 = vector.load %arg1[%c0_26, %c0_27, %c0_28, %c0_29] : memref<1x8x16x128xf32, #tpu.memory_space<vmem>>, vector<1x1x16x128xf32>
    %58 = vector.shape_cast %57 : vector<1x1x16x128xf32> to vector<16x128xf32>
    %59 = vector.broadcast %52 : vector<1x1xf32> to vector<16x128xf32>
    %60 = arith.mulf %58, %59 : vector<16x128xf32>
    %61 = vector.broadcast %56 : vector<1x1xf32> to vector<16x128xf32>
    %62 = arith.addf %60, %61 : vector<16x128xf32>
    %63 = arith.mulf %2, %62 : vector<16x128xf32>
    %64 = math.tanh %63 : vector<16x128xf32>
    %cst_30 = arith.constant 1.000000e+00 : f32
    %65 = vector.broadcast %cst_30 : f32 to vector<16x128xf32>
    %66 = arith.addf %65, %64 : vector<16x128xf32>
    %c0_31 = arith.constant 0 : index
    %c0_32 = arith.constant 0 : index
    %c0_33 = arith.constant 0 : index
    %67 = vector.load %arg6[%c0_31, %c0_32, %c0_33] : memref<8x16x128xf32, #tpu.memory_space<vmem>>, vector<1x16x128xf32>
    %68 = vector.shape_cast %67 : vector<1x16x128xf32> to vector<16x128xf32>
    %69 = vector.shape_cast %66 : vector<16x128xf32> to vector<1x16x128xf32>
    tpu.vector_store %arg6[%c0_31, %c0_32, %c0_33], %69 {strides = array<i32>} : memref<8x16x128xf32, #tpu.memory_space<vmem>>, vector<1x16x128xf32>,
    %c1_34 = arith.constant 1 : index
    %70 = memref.load %arg2[%c1_34] : memref<8xf32, #tpu.memory_space<smem>>
    %71 = vector.broadcast %70 : f32 to vector<1x1xf32>
    %72 = arith.mulf %49, %71 : vector<1x1xf32>
    %c1_35 = arith.constant 1 : index
    %73 = memref.load %arg3[%c1_35] : memref<8xf32, #tpu.memory_space<smem>>
    %74 = arith.mulf %21, %72 : vector<1x1xf32>
    %75 = vector.broadcast %73 : f32 to vector<1x1xf32>
    %76 = arith.subf %75, %74 : vector<1x1xf32>
    %c0_36 = arith.constant 0 : index
    %c1_37 = arith.constant 1 : index
    %c0_38 = arith.constant 0 : index
    %c0_39 = arith.constant 0 : index
    %77 = vector.load %arg1[%c0_36, %c1_37, %c0_38, %c0_39] : memref<1x8x16x128xf32, #tpu.memory_space<vmem>>, vector<1x1x16x128xf32>
    %78 = vector.shape_cast %77 : vector<1x1x16x128xf32> to vector<16x128xf32>
    %79 = vector.broadcast %72 : vector<1x1xf32> to vector<16x128xf32>
    %80 = arith.mulf %78, %79 : vector<16x128xf32>
    %81 = vector.broadcast %76 : vector<1x1xf32> to vector<16x128xf32>
    %82 = arith.addf %80, %81 : vector<16x128xf32>
    %83 = arith.mulf %2, %82 : vector<16x128xf32>
    %84 = math.tanh %83 : vector<16x128xf32>
    %cst_40 = arith.constant 1.000000e+00 : f32
    %85 = vector.broadcast %cst_40 : f32 to vector<16x128xf32>
    %86 = arith.addf %85, %84 : vector<16x128xf32>
    %c1_41 = arith.constant 1 : index
    %c0_42 = arith.constant 0 : index
    %c0_43 = arith.constant 0 : index
    %87 = vector.load %arg6[%c1_41, %c0_42, %c0_43] : memref<8x16x128xf32, #tpu.memory_space<vmem>>, vector<1x16x128xf32>
    %88 = vector.shape_cast %87 : vector<1x16x128xf32> to vector<16x128xf32>
    %89 = vector.shape_cast %86 : vector<16x128xf32> to vector<1x16x128xf32>
    tpu.vector_store %arg6[%c1_41, %c0_42, %c0_43], %89 {strides = array<i32>} : memref<8x16x128xf32, #tpu.memory_space<vmem>>, vector<1x16x128xf32>,
    %cst_44 = arith.constant 0.000000e+00 : f32
    %90 = vector.broadcast %cst_44 : f32 to vector<1x1xf32>
    %c0_45 = arith.constant 0 : index
    %c2 = arith.constant 2 : index
    %c0_46 = arith.constant 0 : index
    %c0_47 = arith.constant 0 : index
    %91 = vector.load %arg1[%c0_45, %c2, %c0_46, %c0_47] : memref<1x8x16x128xf32, #tpu.memory_space<vmem>>, vector<1x1x16x128xf32>
    %92 = vector.shape_cast %91 : vector<1x1x16x128xf32> to vector<16x128xf32>
    %93 = vector.shape_cast %92 : vector<16x128xf32> to vector<1x16x128xf32>
    %cst_48 = arith.constant dense<0.000000e+00> : vector<1xf32>
    %94 = vector.multi_reduction <add>, %93, %cst_48 [1, 2] : vector<1x16x128xf32> to vector<1xf32>
    %95 = vector.shape_cast %94 : vector<1xf32> to vector<1x1x1xf32>
    %96 = vector.extract %95[0, 0, 0] : f32 from vector<1x1x1xf32>
    %97 = vector.broadcast %96 : f32 to vector<1x1xf32>
    %98 = arith.addf %90, %97 : vector<1x1xf32>
    %c0_49 = arith.constant 0 : index
    %c3 = arith.constant 3 : index
    %c0_50 = arith.constant 0 : index
    %c0_51 = arith.constant 0 : index
    %99 = vector.load %arg1[%c0_49, %c3, %c0_50, %c0_51] : memref<1x8x16x128xf32, #tpu.memory_space<vmem>>, vector<1x1x16x128xf32>
    %100 = vector.shape_cast %99 : vector<1x1x16x128xf32> to vector<16x128xf32>
    %101 = vector.shape_cast %100 : vector<16x128xf32> to vector<1x16x128xf32>
    %cst_52 = arith.constant dense<0.000000e+00> : vector<1xf32>
    %102 = vector.multi_reduction <add>, %101, %cst_52 [1, 2] : vector<1x16x128xf32> to vector<1xf32>
    %103 = vector.shape_cast %102 : vector<1xf32> to vector<1x1x1xf32>
    %104 = vector.extract %103[0, 0, 0] : f32 from vector<1x1x1xf32>
    %105 = vector.broadcast %104 : f32 to vector<1x1xf32>
    %106 = arith.addf %98, %105 : vector<1x1xf32>
    %cst_53 = arith.constant 2.44140625E-4 : f32
    %107 = vector.broadcast %cst_53 : f32 to vector<1x1xf32>
    %108 = arith.mulf %106, %107 : vector<1x1xf32>
    %cst_54 = arith.constant 0.000000e+00 : f32
    %109 = vector.broadcast %cst_54 : f32 to vector<1x1xf32>
    %c0_55 = arith.constant 0 : index
    %c2_56 = arith.constant 2 : index
    %c0_57 = arith.constant 0 : index
    %c0_58 = arith.constant 0 : index
    %110 = vector.load %arg1[%c0_55, %c2_56, %c0_57, %c0_58] : memref<1x8x16x128xf32, #tpu.memory_space<vmem>>, vector<1x1x16x128xf32>
    %111 = vector.shape_cast %110 : vector<1x1x16x128xf32> to vector<16x128xf32>
    %112 = vector.broadcast %108 : vector<1x1xf32> to vector<16x128xf32>
    %113 = arith.subf %111, %112 : vector<16x128xf32>
    %114 = arith.mulf %113, %113 : vector<16x128xf32>
    %115 = vector.shape_cast %114 : vector<16x128xf32> to vector<1x16x128xf32>
    %cst_59 = arith.constant dense<0.000000e+00> : vector<1xf32>
    %116 = vector.multi_reduction <add>, %115, %cst_59 [1, 2] : vector<1x16x128xf32> to vector<1xf32>
    %117 = vector.shape_cast %116 : vector<1xf32> to vector<1x1x1xf32>
    %118 = vector.extract %117[0, 0, 0] : f32 from vector<1x1x1xf32>
    %119 = vector.broadcast %118 : f32 to vector<1x1xf32>
    %120 = arith.addf %109, %119 : vector<1x1xf32>
    %c0_60 = arith.constant 0 : index
    %c3_61 = arith.constant 3 : index
    %c0_62 = arith.constant 0 : index
    %c0_63 = arith.constant 0 : index
    %121 = vector.load %arg1[%c0_60, %c3_61, %c0_62, %c0_63] : memref<1x8x16x128xf32, #tpu.memory_space<vmem>>, vector<1x1x16x128xf32>
    %122 = vector.shape_cast %121 : vector<1x1x16x128xf32> to vector<16x128xf32>
    %123 = vector.broadcast %108 : vector<1x1xf32> to vector<16x128xf32>
    %124 = arith.subf %122, %123 : vector<16x128xf32>
    %125 = arith.mulf %124, %124 : vector<16x128xf32>
    %126 = vector.shape_cast %125 : vector<16x128xf32> to vector<1x16x128xf32>
    %cst_64 = arith.constant dense<0.000000e+00> : vector<1xf32>
    %127 = vector.multi_reduction <add>, %126, %cst_64 [1, 2] : vector<1x16x128xf32> to vector<1xf32>
    %128 = vector.shape_cast %127 : vector<1xf32> to vector<1x1x1xf32>
    %129 = vector.extract %128[0, 0, 0] : f32 from vector<1x1x1xf32>
    %130 = vector.broadcast %129 : f32 to vector<1x1xf32>
    %131 = arith.addf %120, %130 : vector<1x1xf32>
    %cst_65 = arith.constant 2.44140625E-4 : f32
    %132 = vector.broadcast %cst_65 : f32 to vector<1x1xf32>
    %133 = arith.mulf %131, %132 : vector<1x1xf32>
    %cst_66 = arith.constant 9.99999974E-6 : f32
    %134 = vector.broadcast %cst_66 : f32 to vector<1x1xf32>
    %135 = arith.addf %133, %134 : vector<1x1xf32>
    %136 = math.rsqrt %135 : vector<1x1xf32>
    %c2_67 = arith.constant 2 : index
    %137 = memref.load %arg2[%c2_67] : memref<8xf32, #tpu.memory_space<smem>>
    %138 = vector.broadcast %137 : f32 to vector<1x1xf32>
    %139 = arith.mulf %136, %138 : vector<1x1xf32>
    %c2_68 = arith.constant 2 : index
    %140 = memref.load %arg3[%c2_68] : memref<8xf32, #tpu.memory_space<smem>>
    %141 = arith.mulf %108, %139 : vector<1x1xf32>
    %142 = vector.broadcast %140 : f32 to vector<1x1xf32>
    %143 = arith.subf %142, %141 : vector<1x1xf32>
    %c0_69 = arith.constant 0 : index
    %c2_70 = arith.constant 2 : index
    %c0_71 = arith.constant 0 : index
    %c0_72 = arith.constant 0 : index
    %144 = vector.load %arg1[%c0_69, %c2_70, %c0_71, %c0_72] : memref<1x8x16x128xf32, #tpu.memory_space<vmem>>, vector<1x1x16x128xf32>
    %145 = vector.shape_cast %144 : vector<1x1x16x128xf32> to vector<16x128xf32>
    %146 = vector.broadcast %139 : vector<1x1xf32> to vector<16x128xf32>
    %147 = arith.mulf %145, %146 : vector<16x128xf32>
    %148 = vector.broadcast %143 : vector<1x1xf32> to vector<16x128xf32>
    %149 = arith.addf %147, %148 : vector<16x128xf32>
    %150 = arith.mulf %2, %149 : vector<16x128xf32>
    %151 = math.tanh %150 : vector<16x128xf32>
    %cst_73 = arith.constant 1.000000e+00 : f32
    %152 = vector.broadcast %cst_73 : f32 to vector<16x128xf32>
    %153 = arith.addf %152, %151 : vector<16x128xf32>
    %c2_74 = arith.constant 2 : index
    %c0_75 = arith.constant 0 : index
    %c0_76 = arith.constant 0 : index
    %154 = vector.load %arg6[%c2_74, %c0_75, %c0_76] : memref<8x16x128xf32, #tpu.memory_space<vmem>>, vector<1x16x128xf32>
    %155 = vector.shape_cast %154 : vector<1x16x128xf32> to vector<16x128xf32>
    %156 = vector.shape_cast %153 : vector<16x128xf32> to vector<1x16x128xf32>
    tpu.vector_store %arg6[%c2_74, %c0_75, %c0_76], %156 {strides = array<i32>} : memref<8x16x128xf32, #tpu.memory_space<vmem>>, vector<1x16x128xf32>,
    %c3_77 = arith.constant 3 : index
    %157 = memref.load %arg2[%c3_77] : memref<8xf32, #tpu.memory_space<smem>>
    %158 = vector.broadcast %157 : f32 to vector<1x1xf32>
    %159 = arith.mulf %136, %158 : vector<1x1xf32>
    %c3_78 = arith.constant 3 : index
    %160 = memref.load %arg3[%c3_78] : memref<8xf32, #tpu.memory_space<smem>>
    %161 = arith.mulf %108, %159 : vector<1x1xf32>
    %162 = vector.broadcast %160 : f32 to vector<1x1xf32>
    %163 = arith.subf %162, %161 : vector<1x1xf32>
    %c0_79 = arith.constant 0 : index
    %c3_80 = arith.constant 3 : index
    %c0_81 = arith.constant 0 : index
    %c0_82 = arith.constant 0 : index
    %164 = vector.load %arg1[%c0_79, %c3_80, %c0_81, %c0_82] : memref<1x8x16x128xf32, #tpu.memory_space<vmem>>, vector<1x1x16x128xf32>
    %165 = vector.shape_cast %164 : vector<1x1x16x128xf32> to vector<16x128xf32>
    %166 = vector.broadcast %159 : vector<1x1xf32> to vector<16x128xf32>
    %167 = arith.mulf %165, %166 : vector<16x128xf32>
    %168 = vector.broadcast %163 : vector<1x1xf32> to vector<16x128xf32>
    %169 = arith.addf %167, %168 : vector<16x128xf32>
    %170 = arith.mulf %2, %169 : vector<16x128xf32>
    %171 = math.tanh %170 : vector<16x128xf32>
    %cst_83 = arith.constant 1.000000e+00 : f32
    %172 = vector.broadcast %cst_83 : f32 to vector<16x128xf32>
    %173 = arith.addf %172, %171 : vector<16x128xf32>
    %c3_84 = arith.constant 3 : index
    %c0_85 = arith.constant 0 : index
    %c0_86 = arith.constant 0 : index
    %174 = vector.load %arg6[%c3_84, %c0_85, %c0_86] : memref<8x16x128xf32, #tpu.memory_space<vmem>>, vector<1x16x128xf32>
    %175 = vector.shape_cast %174 : vector<1x16x128xf32> to vector<16x128xf32>
    %176 = vector.shape_cast %173 : vector<16x128xf32> to vector<1x16x128xf32>
    tpu.vector_store %arg6[%c3_84, %c0_85, %c0_86], %176 {strides = array<i32>} : memref<8x16x128xf32, #tpu.memory_space<vmem>>, vector<1x16x128xf32>,
    %cst_87 = arith.constant 0.000000e+00 : f32
    %177 = vector.broadcast %cst_87 : f32 to vector<1x1xf32>
    %c0_88 = arith.constant 0 : index
    %c4 = arith.constant 4 : index
    %c0_89 = arith.constant 0 : index
    %c0_90 = arith.constant 0 : index
    %178 = vector.load %arg1[%c0_88, %c4, %c0_89, %c0_90] : memref<1x8x16x128xf32, #tpu.memory_space<vmem>>, vector<1x1x16x128xf32>
    %179 = vector.shape_cast %178 : vector<1x1x16x128xf32> to vector<16x128xf32>
    %180 = vector.shape_cast %179 : vector<16x128xf32> to vector<1x16x128xf32>
    %cst_91 = arith.constant dense<0.000000e+00> : vector<1xf32>
    %181 = vector.multi_reduction <add>, %180, %cst_91 [1, 2] : vector<1x16x128xf32> to vector<1xf32>
    %182 = vector.shape_cast %181 : vector<1xf32> to vector<1x1x1xf32>
    %183 = vector.extract %182[0, 0, 0] : f32 from vector<1x1x1xf32>
    %184 = vector.broadcast %183 : f32 to vector<1x1xf32>
    %185 = arith.addf %177, %184 : vector<1x1xf32>
    %c0_92 = arith.constant 0 : index
    %c5 = arith.constant 5 : index
    %c0_93 = arith.constant 0 : index
    %c0_94 = arith.constant 0 : index
    %186 = vector.load %arg1[%c0_92, %c5, %c0_93, %c0_94] : memref<1x8x16x128xf32, #tpu.memory_space<vmem>>, vector<1x1x16x128xf32>
    %187 = vector.shape_cast %186 : vector<1x1x16x128xf32> to vector<16x128xf32>
    %188 = vector.shape_cast %187 : vector<16x128xf32> to vector<1x16x128xf32>
    %cst_95 = arith.constant dense<0.000000e+00> : vector<1xf32>
    %189 = vector.multi_reduction <add>, %188, %cst_95 [1, 2] : vector<1x16x128xf32> to vector<1xf32>
    %190 = vector.shape_cast %189 : vector<1xf32> to vector<1x1x1xf32>
    %191 = vector.extract %190[0, 0, 0] : f32 from vector<1x1x1xf32>
    %192 = vector.broadcast %191 : f32 to vector<1x1xf32>
    %193 = arith.addf %185, %192 : vector<1x1xf32>
    %cst_96 = arith.constant 2.44140625E-4 : f32
    %194 = vector.broadcast %cst_96 : f32 to vector<1x1xf32>
    %195 = arith.mulf %193, %194 : vector<1x1xf32>
    %cst_97 = arith.constant 0.000000e+00 : f32
    %196 = vector.broadcast %cst_97 : f32 to vector<1x1xf32>
    %c0_98 = arith.constant 0 : index
    %c4_99 = arith.constant 4 : index
    %c0_100 = arith.constant 0 : index
    %c0_101 = arith.constant 0 : index
    %197 = vector.load %arg1[%c0_98, %c4_99, %c0_100, %c0_101] : memref<1x8x16x128xf32, #tpu.memory_space<vmem>>, vector<1x1x16x128xf32>
    %198 = vector.shape_cast %197 : vector<1x1x16x128xf32> to vector<16x128xf32>
    %199 = vector.broadcast %195 : vector<1x1xf32> to vector<16x128xf32>
    %200 = arith.subf %198, %199 : vector<16x128xf32>
    %201 = arith.mulf %200, %200 : vector<16x128xf32>
    %202 = vector.shape_cast %201 : vector<16x128xf32> to vector<1x16x128xf32>
    %cst_102 = arith.constant dense<0.000000e+00> : vector<1xf32>
    %203 = vector.multi_reduction <add>, %202, %cst_102 [1, 2] : vector<1x16x128xf32> to vector<1xf32>
    %204 = vector.shape_cast %203 : vector<1xf32> to vector<1x1x1xf32>
    %205 = vector.extract %204[0, 0, 0] : f32 from vector<1x1x1xf32>
    %206 = vector.broadcast %205 : f32 to vector<1x1xf32>
    %207 = arith.addf %196, %206 : vector<1x1xf32>
    %c0_103 = arith.constant 0 : index
    %c5_104 = arith.constant 5 : index
    %c0_105 = arith.constant 0 : index
    %c0_106 = arith.constant 0 : index
    %208 = vector.load %arg1[%c0_103, %c5_104, %c0_105, %c0_106] : memref<1x8x16x128xf32, #tpu.memory_space<vmem>>, vector<1x1x16x128xf32>
    %209 = vector.shape_cast %208 : vector<1x1x16x128xf32> to vector<16x128xf32>
    %210 = vector.broadcast %195 : vector<1x1xf32> to vector<16x128xf32>
    %211 = arith.subf %209, %210 : vector<16x128xf32>
    %212 = arith.mulf %211, %211 : vector<16x128xf32>
    %213 = vector.shape_cast %212 : vector<16x128xf32> to vector<1x16x128xf32>
    %cst_107 = arith.constant dense<0.000000e+00> : vector<1xf32>
    %214 = vector.multi_reduction <add>, %213, %cst_107 [1, 2] : vector<1x16x128xf32> to vector<1xf32>
    %215 = vector.shape_cast %214 : vector<1xf32> to vector<1x1x1xf32>
    %216 = vector.extract %215[0, 0, 0] : f32 from vector<1x1x1xf32>
    %217 = vector.broadcast %216 : f32 to vector<1x1xf32>
    %218 = arith.addf %207, %217 : vector<1x1xf32>
    %cst_108 = arith.constant 2.44140625E-4 : f32
    %219 = vector.broadcast %cst_108 : f32 to vector<1x1xf32>
    %220 = arith.mulf %218, %219 : vector<1x1xf32>
    %cst_109 = arith.constant 9.99999974E-6 : f32
    %221 = vector.broadcast %cst_109 : f32 to vector<1x1xf32>
    %222 = arith.addf %220, %221 : vector<1x1xf32>
    %223 = math.rsqrt %222 : vector<1x1xf32>
    %c4_110 = arith.constant 4 : index
    %224 = memref.load %arg2[%c4_110] : memref<8xf32, #tpu.memory_space<smem>>
    %225 = vector.broadcast %224 : f32 to vector<1x1xf32>
    %226 = arith.mulf %223, %225 : vector<1x1xf32>
    %c4_111 = arith.constant 4 : index
    %227 = memref.load %arg3[%c4_111] : memref<8xf32, #tpu.memory_space<smem>>
    %228 = arith.mulf %195, %226 : vector<1x1xf32>
    %229 = vector.broadcast %227 : f32 to vector<1x1xf32>
    %230 = arith.subf %229, %228 : vector<1x1xf32>
    %c0_112 = arith.constant 0 : index
    %c4_113 = arith.constant 4 : index
    %c0_114 = arith.constant 0 : index
    %c0_115 = arith.constant 0 : index
    %231 = vector.load %arg1[%c0_112, %c4_113, %c0_114, %c0_115] : memref<1x8x16x128xf32, #tpu.memory_space<vmem>>, vector<1x1x16x128xf32>
    %232 = vector.shape_cast %231 : vector<1x1x16x128xf32> to vector<16x128xf32>
    %233 = vector.broadcast %226 : vector<1x1xf32> to vector<16x128xf32>
    %234 = arith.mulf %232, %233 : vector<16x128xf32>
    %235 = vector.broadcast %230 : vector<1x1xf32> to vector<16x128xf32>
    %236 = arith.addf %234, %235 : vector<16x128xf32>
    %237 = arith.mulf %2, %236 : vector<16x128xf32>
    %238 = math.tanh %237 : vector<16x128xf32>
    %cst_116 = arith.constant 1.000000e+00 : f32
    %239 = vector.broadcast %cst_116 : f32 to vector<16x128xf32>
    %240 = arith.addf %239, %238 : vector<16x128xf32>
    %c4_117 = arith.constant 4 : index
    %c0_118 = arith.constant 0 : index
    %c0_119 = arith.constant 0 : index
    %241 = vector.load %arg6[%c4_117, %c0_118, %c0_119] : memref<8x16x128xf32, #tpu.memory_space<vmem>>, vector<1x16x128xf32>
    %242 = vector.shape_cast %241 : vector<1x16x128xf32> to vector<16x128xf32>
    %243 = vector.shape_cast %240 : vector<16x128xf32> to vector<1x16x128xf32>
    tpu.vector_store %arg6[%c4_117, %c0_118, %c0_119], %243 {strides = array<i32>} : memref<8x16x128xf32, #tpu.memory_space<vmem>>, vector<1x16x128xf32>,
    %c5_120 = arith.constant 5 : index
    %244 = memref.load %arg2[%c5_120] : memref<8xf32, #tpu.memory_space<smem>>
    %245 = vector.broadcast %244 : f32 to vector<1x1xf32>
    %246 = arith.mulf %223, %245 : vector<1x1xf32>
    %c5_121 = arith.constant 5 : index
    %247 = memref.load %arg3[%c5_121] : memref<8xf32, #tpu.memory_space<smem>>
    %248 = arith.mulf %195, %246 : vector<1x1xf32>
    %249 = vector.broadcast %247 : f32 to vector<1x1xf32>
    %250 = arith.subf %249, %248 : vector<1x1xf32>
    %c0_122 = arith.constant 0 : index
    %c5_123 = arith.constant 5 : index
    %c0_124 = arith.constant 0 : index
    %c0_125 = arith.constant 0 : index
    %251 = vector.load %arg1[%c0_122, %c5_123, %c0_124, %c0_125] : memref<1x8x16x128xf32, #tpu.memory_space<vmem>>, vector<1x1x16x128xf32>
    %252 = vector.shape_cast %251 : vector<1x1x16x128xf32> to vector<16x128xf32>
    %253 = vector.broadcast %246 : vector<1x1xf32> to vector<16x128xf32>
    %254 = arith.mulf %252, %253 : vector<16x128xf32>
    %255 = vector.broadcast %250 : vector<1x1xf32> to vector<16x128xf32>
    %256 = arith.addf %254, %255 : vector<16x128xf32>
    %257 = arith.mulf %2, %256 : vector<16x128xf32>
    %258 = math.tanh %257 : vector<16x128xf32>
    %cst_126 = arith.constant 1.000000e+00 : f32
    %259 = vector.broadcast %cst_126 : f32 to vector<16x128xf32>
    %260 = arith.addf %259, %258 : vector<16x128xf32>
    %c5_127 = arith.constant 5 : index
    %c0_128 = arith.constant 0 : index
    %c0_129 = arith.constant 0 : index
    %261 = vector.load %arg6[%c5_127, %c0_128, %c0_129] : memref<8x16x128xf32, #tpu.memory_space<vmem>>, vector<1x16x128xf32>
    %262 = vector.shape_cast %261 : vector<1x16x128xf32> to vector<16x128xf32>
    %263 = vector.shape_cast %260 : vector<16x128xf32> to vector<1x16x128xf32>
    tpu.vector_store %arg6[%c5_127, %c0_128, %c0_129], %263 {strides = array<i32>} : memref<8x16x128xf32, #tpu.memory_space<vmem>>, vector<1x16x128xf32>,
    %cst_130 = arith.constant 0.000000e+00 : f32
    %264 = vector.broadcast %cst_130 : f32 to vector<1x1xf32>
    %c0_131 = arith.constant 0 : index
    %c6 = arith.constant 6 : index
    %c0_132 = arith.constant 0 : index
    %c0_133 = arith.constant 0 : index
    %265 = vector.load %arg1[%c0_131, %c6, %c0_132, %c0_133] : memref<1x8x16x128xf32, #tpu.memory_space<vmem>>, vector<1x1x16x128xf32>
    %266 = vector.shape_cast %265 : vector<1x1x16x128xf32> to vector<16x128xf32>
    %267 = vector.shape_cast %266 : vector<16x128xf32> to vector<1x16x128xf32>
    %cst_134 = arith.constant dense<0.000000e+00> : vector<1xf32>
    %268 = vector.multi_reduction <add>, %267, %cst_134 [1, 2] : vector<1x16x128xf32> to vector<1xf32>
    %269 = vector.shape_cast %268 : vector<1xf32> to vector<1x1x1xf32>
    %270 = vector.extract %269[0, 0, 0] : f32 from vector<1x1x1xf32>
    %271 = vector.broadcast %270 : f32 to vector<1x1xf32>
    %272 = arith.addf %264, %271 : vector<1x1xf32>
    %c0_135 = arith.constant 0 : index
    %c7 = arith.constant 7 : index
    %c0_136 = arith.constant 0 : index
    %c0_137 = arith.constant 0 : index
    %273 = vector.load %arg1[%c0_135, %c7, %c0_136, %c0_137] : memref<1x8x16x128xf32, #tpu.memory_space<vmem>>, vector<1x1x16x128xf32>
    %274 = vector.shape_cast %273 : vector<1x1x16x128xf32> to vector<16x128xf32>
    %275 = vector.shape_cast %274 : vector<16x128xf32> to vector<1x16x128xf32>
    %cst_138 = arith.constant dense<0.000000e+00> : vector<1xf32>
    %276 = vector.multi_reduction <add>, %275, %cst_138 [1, 2] : vector<1x16x128xf32> to vector<1xf32>
    %277 = vector.shape_cast %276 : vector<1xf32> to vector<1x1x1xf32>
    %278 = vector.extract %277[0, 0, 0] : f32 from vector<1x1x1xf32>
    %279 = vector.broadcast %278 : f32 to vector<1x1xf32>
    %280 = arith.addf %272, %279 : vector<1x1xf32>
    %cst_139 = arith.constant 2.44140625E-4 : f32
    %281 = vector.broadcast %cst_139 : f32 to vector<1x1xf32>
    %282 = arith.mulf %280, %281 : vector<1x1xf32>
    %cst_140 = arith.constant 0.000000e+00 : f32
    %283 = vector.broadcast %cst_140 : f32 to vector<1x1xf32>
    %c0_141 = arith.constant 0 : index
    %c6_142 = arith.constant 6 : index
    %c0_143 = arith.constant 0 : index
    %c0_144 = arith.constant 0 : index
    %284 = vector.load %arg1[%c0_141, %c6_142, %c0_143, %c0_144] : memref<1x8x16x128xf32, #tpu.memory_space<vmem>>, vector<1x1x16x128xf32>
    %285 = vector.shape_cast %284 : vector<1x1x16x128xf32> to vector<16x128xf32>
    %286 = vector.broadcast %282 : vector<1x1xf32> to vector<16x128xf32>
    %287 = arith.subf %285, %286 : vector<16x128xf32>
    %288 = arith.mulf %287, %287 : vector<16x128xf32>
    %289 = vector.shape_cast %288 : vector<16x128xf32> to vector<1x16x128xf32>
    %cst_145 = arith.constant dense<0.000000e+00> : vector<1xf32>
    %290 = vector.multi_reduction <add>, %289, %cst_145 [1, 2] : vector<1x16x128xf32> to vector<1xf32>
    %291 = vector.shape_cast %290 : vector<1xf32> to vector<1x1x1xf32>
    %292 = vector.extract %291[0, 0, 0] : f32 from vector<1x1x1xf32>
    %293 = vector.broadcast %292 : f32 to vector<1x1xf32>
    %294 = arith.addf %283, %293 : vector<1x1xf32>
    %c0_146 = arith.constant 0 : index
    %c7_147 = arith.constant 7 : index
    %c0_148 = arith.constant 0 : index
    %c0_149 = arith.constant 0 : index
    %295 = vector.load %arg1[%c0_146, %c7_147, %c0_148, %c0_149] : memref<1x8x16x128xf32, #tpu.memory_space<vmem>>, vector<1x1x16x128xf32>
    %296 = vector.shape_cast %295 : vector<1x1x16x128xf32> to vector<16x128xf32>
    %297 = vector.broadcast %282 : vector<1x1xf32> to vector<16x128xf32>
    %298 = arith.subf %296, %297 : vector<16x128xf32>
    %299 = arith.mulf %298, %298 : vector<16x128xf32>
    %300 = vector.shape_cast %299 : vector<16x128xf32> to vector<1x16x128xf32>
    %cst_150 = arith.constant dense<0.000000e+00> : vector<1xf32>
    %301 = vector.multi_reduction <add>, %300, %cst_150 [1, 2] : vector<1x16x128xf32> to vector<1xf32>
    %302 = vector.shape_cast %301 : vector<1xf32> to vector<1x1x1xf32>
    %303 = vector.extract %302[0, 0, 0] : f32 from vector<1x1x1xf32>
    %304 = vector.broadcast %303 : f32 to vector<1x1xf32>
    %305 = arith.addf %294, %304 : vector<1x1xf32>
    %cst_151 = arith.constant 2.44140625E-4 : f32
    %306 = vector.broadcast %cst_151 : f32 to vector<1x1xf32>
    %307 = arith.mulf %305, %306 : vector<1x1xf32>
    %cst_152 = arith.constant 9.99999974E-6 : f32
    %308 = vector.broadcast %cst_152 : f32 to vector<1x1xf32>
    %309 = arith.addf %307, %308 : vector<1x1xf32>
    %310 = math.rsqrt %309 : vector<1x1xf32>
    %c6_153 = arith.constant 6 : index
    %311 = memref.load %arg2[%c6_153] : memref<8xf32, #tpu.memory_space<smem>>
    %312 = vector.broadcast %311 : f32 to vector<1x1xf32>
    %313 = arith.mulf %310, %312 : vector<1x1xf32>
    %c6_154 = arith.constant 6 : index
    %314 = memref.load %arg3[%c6_154] : memref<8xf32, #tpu.memory_space<smem>>
    %315 = arith.mulf %282, %313 : vector<1x1xf32>
    %316 = vector.broadcast %314 : f32 to vector<1x1xf32>
    %317 = arith.subf %316, %315 : vector<1x1xf32>
    %c0_155 = arith.constant 0 : index
    %c6_156 = arith.constant 6 : index
    %c0_157 = arith.constant 0 : index
    %c0_158 = arith.constant 0 : index
    %318 = vector.load %arg1[%c0_155, %c6_156, %c0_157, %c0_158] : memref<1x8x16x128xf32, #tpu.memory_space<vmem>>, vector<1x1x16x128xf32>
    %319 = vector.shape_cast %318 : vector<1x1x16x128xf32> to vector<16x128xf32>
    %320 = vector.broadcast %313 : vector<1x1xf32> to vector<16x128xf32>
    %321 = arith.mulf %319, %320 : vector<16x128xf32>
    %322 = vector.broadcast %317 : vector<1x1xf32> to vector<16x128xf32>
    %323 = arith.addf %321, %322 : vector<16x128xf32>
    %324 = arith.mulf %2, %323 : vector<16x128xf32>
    %325 = math.tanh %324 : vector<16x128xf32>
    %cst_159 = arith.constant 1.000000e+00 : f32
    %326 = vector.broadcast %cst_159 : f32 to vector<16x128xf32>
    %327 = arith.addf %326, %325 : vector<16x128xf32>
    %c6_160 = arith.constant 6 : index
    %c0_161 = arith.constant 0 : index
    %c0_162 = arith.constant 0 : index
    %328 = vector.load %arg6[%c6_160, %c0_161, %c0_162] : memref<8x16x128xf32, #tpu.memory_space<vmem>>, vector<1x16x128xf32>
    %329 = vector.shape_cast %328 : vector<1x16x128xf32> to vector<16x128xf32>
    %330 = vector.shape_cast %327 : vector<16x128xf32> to vector<1x16x128xf32>
    tpu.vector_store %arg6[%c6_160, %c0_161, %c0_162], %330 {strides = array<i32>} : memref<8x16x128xf32, #tpu.memory_space<vmem>>, vector<1x16x128xf32>,
    %c7_163 = arith.constant 7 : index
    %331 = memref.load %arg2[%c7_163] : memref<8xf32, #tpu.memory_space<smem>>
    %332 = vector.broadcast %331 : f32 to vector<1x1xf32>
    %333 = arith.mulf %310, %332 : vector<1x1xf32>
    %c7_164 = arith.constant 7 : index
    %334 = memref.load %arg3[%c7_164] : memref<8xf32, #tpu.memory_space<smem>>
    %335 = arith.mulf %282, %333 : vector<1x1xf32>
    %336 = vector.broadcast %334 : f32 to vector<1x1xf32>
    %337 = arith.subf %336, %335 : vector<1x1xf32>
    %c0_165 = arith.constant 0 : index
    %c7_166 = arith.constant 7 : index
    %c0_167 = arith.constant 0 : index
    %c0_168 = arith.constant 0 : index
    %338 = vector.load %arg1[%c0_165, %c7_166, %c0_167, %c0_168] : memref<1x8x16x128xf32, #tpu.memory_space<vmem>>, vector<1x1x16x128xf32>
    %339 = vector.shape_cast %338 : vector<1x1x16x128xf32> to vector<16x128xf32>
    %340 = vector.broadcast %333 : vector<1x1xf32> to vector<16x128xf32>
    %341 = arith.mulf %339, %340 : vector<16x128xf32>
    %342 = vector.broadcast %337 : vector<1x1xf32> to vector<16x128xf32>
    %343 = arith.addf %341, %342 : vector<16x128xf32>
    %344 = arith.mulf %2, %343 : vector<16x128xf32>
    %345 = math.tanh %344 : vector<16x128xf32>
    %cst_169 = arith.constant 1.000000e+00 : f32
    %346 = vector.broadcast %cst_169 : f32 to vector<16x128xf32>
    %347 = arith.addf %346, %345 : vector<16x128xf32>
    %c7_170 = arith.constant 7 : index
    %c0_171 = arith.constant 0 : index
    %c0_172 = arith.constant 0 : index
    %348 = vector.load %arg6[%c7_170, %c0_171, %c0_172] : memref<8x16x128xf32, #tpu.memory_space<vmem>>, vector<1x16x128xf32>
    %349 = vector.shape_cast %348 : vector<1x16x128xf32> to vector<16x128xf32>
    %350 = vector.shape_cast %347 : vector<16x128xf32> to vector<1x16x128xf32>
    tpu.vector_store %arg6[%c7_170, %c0_171, %c0_172], %350 {strides = array<i32>} : memref<8x16x128xf32, #tpu.memory_space<vmem>>, vector<1x16x128xf32>,
    %c0_173 = arith.constant 0 : index
    %c0_174 = arith.constant 0 : index
    %c0_175 = arith.constant 0 : index
    %c0_176 = arith.constant 0 : index
    %351 = vector.load %arg1[%c0_173, %c0_174, %c0_175, %c0_176] : memref<1x8x16x128xf32, #tpu.memory_space<vmem>>, vector<1x1x16x128xf32>
    %352 = vector.shape_cast %351 : vector<1x1x16x128xf32> to vector<16x128xf32>
    %c0_177 = arith.constant 0 : index
    %c0_178 = arith.constant 0 : index
    %c0_179 = arith.constant 0 : index
    %c0_180 = arith.constant 0 : index
    %353 = vector.load %arg1[%c0_177, %c0_178, %c0_179, %c0_180] : memref<1x8x16x128xf32, #tpu.memory_space<vmem>>, vector<1x1x16x128xf32>
    %354 = vector.shape_cast %353 : vector<1x1x16x128xf32> to vector<16x128xf32>
    %c0_181 = arith.constant 0 : index
    %c0_182 = arith.constant 0 : index
    %c0_183 = arith.constant 0 : index
    %355 = vector.load %arg6[%c0_181, %c0_182, %c0_183] : memref<8x16x128xf32, #tpu.memory_space<vmem>>, vector<1x16x128xf32>
    %356 = vector.shape_cast %355 : vector<1x16x128xf32> to vector<16x128xf32>
    %357 = arith.mulf %356, %352 : vector<16x128xf32>
    %c7_184 = arith.constant 7 : index
    %c0_185 = arith.constant 0 : index
    %c0_186 = arith.constant 0 : index
    %358 = vector.load %arg6[%c7_184, %c0_185, %c0_186] : memref<8x16x128xf32, #tpu.memory_space<vmem>>, vector<1x16x128xf32>
    %359 = vector.shape_cast %358 : vector<1x16x128xf32> to vector<16x128xf32>
    %360 = arith.mulf %359, %354 : vector<16x128xf32>
    %361 = arith.addf %357, %360 : vector<16x128xf32>
    %c0_187 = arith.constant 0 : index
    %c0_188 = arith.constant 0 : index
    %c0_189 = arith.constant 0 : index
    %c0_190 = arith.constant 0 : index
    %362 = vector.load %arg5[%c0_187, %c0_188, %c0_189, %c0_190] : memref<1x8x16x128xf32, #tpu.memory_space<vmem>>, vector<1x1x16x128xf32>
    %363 = vector.shape_cast %362 : vector<1x1x16x128xf32> to vector<16x128xf32>
    %364 = vector.shape_cast %361 : vector<16x128xf32> to vector<1x1x16x128xf32>
    tpu.vector_store %arg5[%c0_187, %c0_188, %c0_189, %c0_190], %364 {strides = array<i32>} : memref<1x8x16x128xf32, #tpu.memory_space<vmem>>, vector<1x1x16x128xf32>,
    %c0_191 = arith.constant 0 : index
    %c1_192 = arith.constant 1 : index
    %c0_193 = arith.constant 0 : index
    %c0_194 = arith.constant 0 : index
    %365 = vector.load %arg1[%c0_191, %c1_192, %c0_193, %c0_194] : memref<1x8x16x128xf32, #tpu.memory_space<vmem>>, vector<1x1x16x128xf32>
    %366 = vector.shape_cast %365 : vector<1x1x16x128xf32> to vector<16x128xf32>
    %c0_195 = arith.constant 0 : index
    %c2_196 = arith.constant 2 : index
    %c0_197 = arith.constant 0 : index
    %c0_198 = arith.constant 0 : index
    %367 = vector.load %arg1[%c0_195, %c2_196, %c0_197, %c0_198] : memref<1x8x16x128xf32, #tpu.memory_space<vmem>>, vector<1x1x16x128xf32>
    %368 = vector.shape_cast %367 : vector<1x1x16x128xf32> to vector<16x128xf32>
    %c1_199 = arith.constant 1 : index
    %c0_200 = arith.constant 0 : index
    %c0_201 = arith.constant 0 : index
    %369 = vector.load %arg6[%c1_199, %c0_200, %c0_201] : memref<8x16x128xf32, #tpu.memory_space<vmem>>, vector<1x16x128xf32>
    %370 = vector.shape_cast %369 : vector<1x16x128xf32> to vector<16x128xf32>
    %371 = arith.mulf %370, %366 : vector<16x128xf32>
    %c5_202 = arith.constant 5 : index
    %c0_203 = arith.constant 0 : index
    %c0_204 = arith.constant 0 : index
    %372 = vector.load %arg6[%c5_202, %c0_203, %c0_204] : memref<8x16x128xf32, #tpu.memory_space<vmem>>, vector<1x16x128xf32>
    %373 = vector.shape_cast %372 : vector<1x16x128xf32> to vector<16x128xf32>
    %374 = arith.mulf %373, %368 : vector<16x128xf32>
    %375 = arith.addf %371, %374 : vector<16x128xf32>
    %c0_205 = arith.constant 0 : index
    %c1_206 = arith.constant 1 : index
    %c0_207 = arith.constant 0 : index
    %c0_208 = arith.constant 0 : index
    %376 = vector.load %arg5[%c0_205, %c1_206, %c0_207, %c0_208] : memref<1x8x16x128xf32, #tpu.memory_space<vmem>>, vector<1x1x16x128xf32>
    %377 = vector.shape_cast %376 : vector<1x1x16x128xf32> to vector<16x128xf32>
    %378 = vector.shape_cast %375 : vector<16x128xf32> to vector<1x1x16x128xf32>
    tpu.vector_store %arg5[%c0_205, %c1_206, %c0_207, %c0_208], %378 {strides = array<i32>} : memref<1x8x16x128xf32, #tpu.memory_space<vmem>>, vector<1x1x16x128xf32>,
    %c0_209 = arith.constant 0 : index
    %c2_210 = arith.constant 2 : index
    %c0_211 = arith.constant 0 : index
    %c0_212 = arith.constant 0 : index
    %379 = vector.load %arg1[%c0_209, %c2_210, %c0_211, %c0_212] : memref<1x8x16x128xf32, #tpu.memory_space<vmem>>, vector<1x1x16x128xf32>
    %380 = vector.shape_cast %379 : vector<1x1x16x128xf32> to vector<16x128xf32>
    %c0_213 = arith.constant 0 : index
    %c4_214 = arith.constant 4 : index
    %c0_215 = arith.constant 0 : index
    %c0_216 = arith.constant 0 : index
    %381 = vector.load %arg1[%c0_213, %c4_214, %c0_215, %c0_216] : memref<1x8x16x128xf32, #tpu.memory_space<vmem>>, vector<1x1x16x128xf32>
    %382 = vector.shape_cast %381 : vector<1x1x16x128xf32> to vector<16x128xf32>
    %c2_217 = arith.constant 2 : index
    %c0_218 = arith.constant 0 : index
    %c0_219 = arith.constant 0 : index
    %383 = vector.load %arg6[%c2_217, %c0_218, %c0_219] : memref<8x16x128xf32, #tpu.memory_space<vmem>>, vector<1x16x128xf32>
    %384 = vector.shape_cast %383 : vector<1x16x128xf32> to vector<16x128xf32>
    %385 = arith.mulf %384, %380 : vector<16x128xf32>
    %c3_220 = arith.constant 3 : index
    %c0_221 = arith.constant 0 : index
    %c0_222 = arith.constant 0 : index
    %386 = vector.load %arg6[%c3_220, %c0_221, %c0_222] : memref<8x16x128xf32, #tpu.memory_space<vmem>>, vector<1x16x128xf32>
    %387 = vector.shape_cast %386 : vector<1x16x128xf32> to vector<16x128xf32>
    %388 = arith.mulf %387, %382 : vector<16x128xf32>
    %389 = arith.addf %385, %388 : vector<16x128xf32>
    %c0_223 = arith.constant 0 : index
    %c2_224 = arith.constant 2 : index
    %c0_225 = arith.constant 0 : index
    %c0_226 = arith.constant 0 : index
    %390 = vector.load %arg5[%c0_223, %c2_224, %c0_225, %c0_226] : memref<1x8x16x128xf32, #tpu.memory_space<vmem>>, vector<1x1x16x128xf32>
    %391 = vector.shape_cast %390 : vector<1x1x16x128xf32> to vector<16x128xf32>
    %392 = vector.shape_cast %389 : vector<16x128xf32> to vector<1x1x16x128xf32>
    tpu.vector_store %arg5[%c0_223, %c2_224, %c0_225, %c0_226], %392 {strides = array<i32>} : memref<1x8x16x128xf32, #tpu.memory_space<vmem>>, vector<1x1x16x128xf32>,
    %c0_227 = arith.constant 0 : index
    %c3_228 = arith.constant 3 : index
    %c0_229 = arith.constant 0 : index
    %c0_230 = arith.constant 0 : index
    %393 = vector.load %arg1[%c0_227, %c3_228, %c0_229, %c0_230] : memref<1x8x16x128xf32, #tpu.memory_space<vmem>>, vector<1x1x16x128xf32>
    %394 = vector.shape_cast %393 : vector<1x1x16x128xf32> to vector<16x128xf32>
    %c0_231 = arith.constant 0 : index
    %c6_232 = arith.constant 6 : index
    %c0_233 = arith.constant 0 : index
    %c0_234 = arith.constant 0 : index
    %395 = vector.load %arg1[%c0_231, %c6_232, %c0_233, %c0_234] : memref<1x8x16x128xf32, #tpu.memory_space<vmem>>, vector<1x1x16x128xf32>
    %396 = vector.shape_cast %395 : vector<1x1x16x128xf32> to vector<16x128xf32>
    %c3_235 = arith.constant 3 : index
    %c0_236 = arith.constant 0 : index
    %c0_237 = arith.constant 0 : index
    %397 = vector.load %arg6[%c3_235, %c0_236, %c0_237] : memref<8x16x128xf32, #tpu.memory_space<vmem>>, vector<1x16x128xf32>
    %398 = vector.shape_cast %397 : vector<1x16x128xf32> to vector<16x128xf32>
    %399 = arith.mulf %398, %394 : vector<16x128xf32>
    %c1_238 = arith.constant 1 : index
    %c0_239 = arith.constant 0 : index
    %c0_240 = arith.constant 0 : index
    %400 = vector.load %arg6[%c1_238, %c0_239, %c0_240] : memref<8x16x128xf32, #tpu.memory_space<vmem>>, vector<1x16x128xf32>
    %401 = vector.shape_cast %400 : vector<1x16x128xf32> to vector<16x128xf32>
    %402 = arith.mulf %401, %396 : vector<16x128xf32>
    %403 = arith.addf %399, %402 : vector<16x128xf32>
    %c0_241 = arith.constant 0 : index
    %c3_242 = arith.constant 3 : index
    %c0_243 = arith.constant 0 : index
    %c0_244 = arith.constant 0 : index
    %404 = vector.load %arg5[%c0_241, %c3_242, %c0_243, %c0_244] : memref<1x8x16x128xf32, #tpu.memory_space<vmem>>, vector<1x1x16x128xf32>
    %405 = vector.shape_cast %404 : vector<1x1x16x128xf32> to vector<16x128xf32>
    %406 = vector.shape_cast %403 : vector<16x128xf32> to vector<1x1x16x128xf32>
    tpu.vector_store %arg5[%c0_241, %c3_242, %c0_243, %c0_244], %406 {strides = array<i32>} : memref<1x8x16x128xf32, #tpu.memory_space<vmem>>, vector<1x1x16x128xf32>,
    %c0_245 = arith.constant 0 : index
    %c4_246 = arith.constant 4 : index
    %c0_247 = arith.constant 0 : index
    %c0_248 = arith.constant 0 : index
    %407 = vector.load %arg1[%c0_245, %c4_246, %c0_247, %c0_248] : memref<1x8x16x128xf32, #tpu.memory_space<vmem>>, vector<1x1x16x128xf32>
    %408 = vector.shape_cast %407 : vector<1x1x16x128xf32> to vector<16x128xf32>
    %c0_249 = arith.constant 0 : index
    %c1_250 = arith.constant 1 : index
    %c0_251 = arith.constant 0 : index
    %c0_252 = arith.constant 0 : index
    %409 = vector.load %arg1[%c0_249, %c1_250, %c0_251, %c0_252] : memref<1x8x16x128xf32, #tpu.memory_space<vmem>>, vector<1x1x16x128xf32>
    %410 = vector.shape_cast %409 : vector<1x1x16x128xf32> to vector<16x128xf32>
    %c4_253 = arith.constant 4 : index
    %c0_254 = arith.constant 0 : index
    %c0_255 = arith.constant 0 : index
    %411 = vector.load %arg6[%c4_253, %c0_254, %c0_255] : memref<8x16x128xf32, #tpu.memory_space<vmem>>, vector<1x16x128xf32>
    %412 = vector.shape_cast %411 : vector<1x16x128xf32> to vector<16x128xf32>
    %413 = arith.mulf %412, %408 : vector<16x128xf32>
    %c6_256 = arith.constant 6 : index
    %c0_257 = arith.constant 0 : index
    %c0_258 = arith.constant 0 : index
    %414 = vector.load %arg6[%c6_256, %c0_257, %c0_258] : memref<8x16x128xf32, #tpu.memory_space<vmem>>, vector<1x16x128xf32>
    %415 = vector.shape_cast %414 : vector<1x16x128xf32> to vector<16x128xf32>
    %416 = arith.mulf %415, %410 : vector<16x128xf32>
    %417 = arith.addf %413, %416 : vector<16x128xf32>
    %c0_259 = arith.constant 0 : index
    %c4_260 = arith.constant 4 : index
    %c0_261 = arith.constant 0 : index
    %c0_262 = arith.constant 0 : index
    %418 = vector.load %arg5[%c0_259, %c4_260, %c0_261, %c0_262] : memref<1x8x16x128xf32, #tpu.memory_space<vmem>>, vector<1x1x16x128xf32>
    %419 = vector.shape_cast %418 : vector<1x1x16x128xf32> to vector<16x128xf32>
    %420 = vector.shape_cast %417 : vector<16x128xf32> to vector<1x1x16x128xf32>
    tpu.vector_store %arg5[%c0_259, %c4_260, %c0_261, %c0_262], %420 {strides = array<i32>} : memref<1x8x16x128xf32, #tpu.memory_space<vmem>>, vector<1x1x16x128xf32>,
    %c0_263 = arith.constant 0 : index
    %c5_264 = arith.constant 5 : index
    %c0_265 = arith.constant 0 : index
    %c0_266 = arith.constant 0 : index
    %421 = vector.load %arg1[%c0_263, %c5_264, %c0_265, %c0_266] : memref<1x8x16x128xf32, #tpu.memory_space<vmem>>, vector<1x1x16x128xf32>
    %422 = vector.shape_cast %421 : vector<1x1x16x128xf32> to vector<16x128xf32>
    %c0_267 = arith.constant 0 : index
    %c3_268 = arith.constant 3 : index
    %c0_269 = arith.constant 0 : index
    %c0_270 = arith.constant 0 : index
    %423 = vector.load %arg1[%c0_267, %c3_268, %c0_269, %c0_270] : memref<1x8x16x128xf32, #tpu.memory_space<vmem>>, vector<1x1x16x128xf32>
    %424 = vector.shape_cast %423 : vector<1x1x16x128xf32> to vector<16x128xf32>
    %c5_271 = arith.constant 5 : index
    %c0_272 = arith.constant 0 : index
    %c0_273 = arith.constant 0 : index
    %425 = vector.load %arg6[%c5_271, %c0_272, %c0_273] : memref<8x16x128xf32, #tpu.memory_space<vmem>>, vector<1x16x128xf32>
    %426 = vector.shape_cast %425 : vector<1x16x128xf32> to vector<16x128xf32>
    %427 = arith.mulf %426, %422 : vector<16x128xf32>
    %c4_274 = arith.constant 4 : index
    %c0_275 = arith.constant 0 : index
    %c0_276 = arith.constant 0 : index
    %428 = vector.load %arg6[%c4_274, %c0_275, %c0_276] : memref<8x16x128xf32, #tpu.memory_space<vmem>>, vector<1x16x128xf32>
    %429 = vector.shape_cast %428 : vector<1x16x128xf32> to vector<16x128xf32>
    %430 = arith.mulf %429, %424 : vector<16x128xf32>
    %431 = arith.addf %427, %430 : vector<16x128xf32>
    %c0_277 = arith.constant 0 : index
    %c5_278 = arith.constant 5 : index
    %c0_279 = arith.constant 0 : index
    %c0_280 = arith.constant 0 : index
    %432 = vector.load %arg5[%c0_277, %c5_278, %c0_279, %c0_280] : memref<1x8x16x128xf32, #tpu.memory_space<vmem>>, vector<1x1x16x128xf32>
    %433 = vector.shape_cast %432 : vector<1x1x16x128xf32> to vector<16x128xf32>
    %434 = vector.shape_cast %431 : vector<16x128xf32> to vector<1x1x16x128xf32>
    tpu.vector_store %arg5[%c0_277, %c5_278, %c0_279, %c0_280], %434 {strides = array<i32>} : memref<1x8x16x128xf32, #tpu.memory_space<vmem>>, vector<1x1x16x128xf32>,
    %c0_281 = arith.constant 0 : index
    %c6_282 = arith.constant 6 : index
    %c0_283 = arith.constant 0 : index
    %c0_284 = arith.constant 0 : index
    %435 = vector.load %arg1[%c0_281, %c6_282, %c0_283, %c0_284] : memref<1x8x16x128xf32, #tpu.memory_space<vmem>>, vector<1x1x16x128xf32>
    %436 = vector.shape_cast %435 : vector<1x1x16x128xf32> to vector<16x128xf32>
    %c0_285 = arith.constant 0 : index
    %c5_286 = arith.constant 5 : index
    %c0_287 = arith.constant 0 : index
    %c0_288 = arith.constant 0 : index
    %437 = vector.load %arg1[%c0_285, %c5_286, %c0_287, %c0_288] : memref<1x8x16x128xf32, #tpu.memory_space<vmem>>, vector<1x1x16x128xf32>
    %438 = vector.shape_cast %437 : vector<1x1x16x128xf32> to vector<16x128xf32>
    %c6_289 = arith.constant 6 : index
    %c0_290 = arith.constant 0 : index
    %c0_291 = arith.constant 0 : index
    %439 = vector.load %arg6[%c6_289, %c0_290, %c0_291] : memref<8x16x128xf32, #tpu.memory_space<vmem>>, vector<1x16x128xf32>
    %440 = vector.shape_cast %439 : vector<1x16x128xf32> to vector<16x128xf32>
    %441 = arith.mulf %440, %436 : vector<16x128xf32>
    %c2_292 = arith.constant 2 : index
    %c0_293 = arith.constant 0 : index
    %c0_294 = arith.constant 0 : index
    %442 = vector.load %arg6[%c2_292, %c0_293, %c0_294] : memref<8x16x128xf32, #tpu.memory_space<vmem>>, vector<1x16x128xf32>
    %443 = vector.shape_cast %442 : vector<1x16x128xf32> to vector<16x128xf32>
    %444 = arith.mulf %443, %438 : vector<16x128xf32>
    %445 = arith.addf %441, %444 : vector<16x128xf32>
    %c0_295 = arith.constant 0 : index
    %c6_296 = arith.constant 6 : index
    %c0_297 = arith.constant 0 : index
    %c0_298 = arith.constant 0 : index
    %446 = vector.load %arg5[%c0_295, %c6_296, %c0_297, %c0_298] : memref<1x8x16x128xf32, #tpu.memory_space<vmem>>, vector<1x1x16x128xf32>
    %447 = vector.shape_cast %446 : vector<1x1x16x128xf32> to vector<16x128xf32>
    %448 = vector.shape_cast %445 : vector<16x128xf32> to vector<1x1x16x128xf32>
    tpu.vector_store %arg5[%c0_295, %c6_296, %c0_297, %c0_298], %448 {strides = array<i32>} : memref<1x8x16x128xf32, #tpu.memory_space<vmem>>, vector<1x1x16x128xf32>,
    %c0_299 = arith.constant 0 : index
    %c7_300 = arith.constant 7 : index
    %c0_301 = arith.constant 0 : index
    %c0_302 = arith.constant 0 : index
    %449 = vector.load %arg1[%c0_299, %c7_300, %c0_301, %c0_302] : memref<1x8x16x128xf32, #tpu.memory_space<vmem>>, vector<1x1x16x128xf32>
    %450 = vector.shape_cast %449 : vector<1x1x16x128xf32> to vector<16x128xf32>
    %c0_303 = arith.constant 0 : index
    %c7_304 = arith.constant 7 : index
    %c0_305 = arith.constant 0 : index
    %c0_306 = arith.constant 0 : index
    %451 = vector.load %arg1[%c0_303, %c7_304, %c0_305, %c0_306] : memref<1x8x16x128xf32, #tpu.memory_space<vmem>>, vector<1x1x16x128xf32>
    %452 = vector.shape_cast %451 : vector<1x1x16x128xf32> to vector<16x128xf32>
    %c7_307 = arith.constant 7 : index
    %c0_308 = arith.constant 0 : index
    %c0_309 = arith.constant 0 : index
    %453 = vector.load %arg6[%c7_307, %c0_308, %c0_309] : memref<8x16x128xf32, #tpu.memory_space<vmem>>, vector<1x16x128xf32>
    %454 = vector.shape_cast %453 : vector<1x16x128xf32> to vector<16x128xf32>
    %455 = arith.mulf %454, %450 : vector<16x128xf32>
    %c0_310 = arith.constant 0 : index
    %c0_311 = arith.constant 0 : index
    %c0_312 = arith.constant 0 : index
    %456 = vector.load %arg6[%c0_310, %c0_311, %c0_312] : memref<8x16x128xf32, #tpu.memory_space<vmem>>, vector<1x16x128xf32>
    %457 = vector.shape_cast %456 : vector<1x16x128xf32> to vector<16x128xf32>
    %458 = arith.mulf %457, %452 : vector<16x128xf32>
    %459 = arith.addf %455, %458 : vector<16x128xf32>
    %c0_313 = arith.constant 0 : index
    %c7_314 = arith.constant 7 : index
    %c0_315 = arith.constant 0 : index
    %c0_316 = arith.constant 0 : index
    %460 = vector.load %arg5[%c0_313, %c7_314, %c0_315, %c0_316] : memref<1x8x16x128xf32, #tpu.memory_space<vmem>>, vector<1x1x16x128xf32>
    %461 = vector.shape_cast %460 : vector<1x1x16x128xf32> to vector<16x128xf32>
    %462 = vector.shape_cast %459 : vector<16x128xf32> to vector<1x1x16x128xf32>
    tpu.vector_store %arg5[%c0_313, %c7_314, %c0_315, %c0_316], %462 {strides = array<i32>} : memref<1x8x16x128xf32, #tpu.memory_space<vmem>>, vector<1x1x16x128xf32>,
    return
  }
  func.func @transform_0(%arg0: i32) -> (i32, i32, i32, i32) {
    %c0_i32 = arith.constant 0 : i32
    %c0_i32_0 = arith.constant 0 : i32
    %c0_i32_1 = arith.constant 0 : i32
    %c0_i32_2 = arith.constant 0 : i32
    return %arg0, %c0_i32, %c0_i32_0, %c0_i32_1 : i32, i32, i32, i32
  }
  func.func @transform_1(%arg0: i32) -> i32 {
    %c0_i32 = arith.constant 0 : i32
    %c0_i32_0 = arith.constant 0 : i32
    return %c0_i32 : i32
  }
  func.func @transform_2(%arg0: i32) -> i32 {
    %c0_i32 = arith.constant 0 : i32
    %c0_i32_0 = arith.constant 0 : i32
    return %c0_i32 : i32
  }
  func.func @transform_3(%arg0: i32) -> (i32, i32) {
    %c0_i32 = arith.constant 0 : i32
    %c0_i32_0 = arith.constant 0 : i32
    %c0_i32_1 = arith.constant 0 : i32
    return %c0_i32, %c0_i32_0 : i32, i32
  }
  func.func @transform_4(%arg0: i32) -> (i32, i32, i32, i32) {
    %c0_i32 = arith.constant 0 : i32
    %c0_i32_0 = arith.constant 0 : i32
    %c0_i32_1 = arith.constant 0 : i32
    %c0_i32_2 = arith.constant 0 : i32
    return %arg0, %c0_i32, %c0_i32_0, %c0_i32_1 : i32, i32, i32, i32
  }
}

</mosaic_0001>

<bundles_post_ra>
// kernel: tpu_custom_call.1
= control target key start
LH: loop header
LB: loop body
LE: loop exit
PB: predicated region body
PF: predicated region fallthrough
CT: control target
= control target key end

     0   :  { %s1761_s0 = inlined_call_operand.hbm [shape: f32[2,8,16,128], index: 0, kind: input, shape index: {}]   ;;  %s1762_s1 = inlined_call_operand.hbm [shape: f32[8], index: 1, kind: input, shape index: {}]   ;;  %s1763_s2 = inlined_call_operand.vmem [shape: f32[8], index: 2, kind: input, shape index: {}]   ;;  %s1764_s3 = inlined_call_operand.vmem [shape: f32[1,128], index: 3, kind: input, shape index: {}]   ;;  %s1765_s4 = inlined_call_operand.hbm [shape: f32[2,8,16,128], index: 4, kind: output, shape index: {}]  }
   0x1   :  { %1766 = sst [smem:[#allocation15_spill]] %s1762_s1 }
   0x2   :  { %1767 = sst [smem:[#allocation16_spill]] %s1763_s2 }
   0x3   :  { %9 = vsyncpa [#allocation4], 0 }
   0x4   :  { %11 = vsyncpa [#allocation4 + $0x1], 0 }
   0x5   :  { %12 = vsyncpa [#allocation6], 0 }
   0x6   :  { %13 = vsyncpa [#allocation7], 0 }
   0x7   :  { %14 = vsyncpa [#allocation5], 0 }
   0x8   :  { %16 = vsyncpa [#allocation5 + $0x1], 0  ;;  %s1366_s15 = smov 0   ;;  %s1368_s16 = smov 0  }
   0x9   :  { %s1370_s17 = smov 0   ;;  %s1372_s18 = smov 0  }
   0xa LB: > { %s1387_s19 = sadd.s32 4294967295, %s1333_s18   ;;  %s959_s20 = sadd.s32 4294967294, %s1333_s18   ;;  %s1333_s18 = sphi %s1372_s18, %s1780_s18   ;;  %s1329_s17 = sphi %s1370_s17, %s1779_s17   ;;  %s1325_s16 = sphi %s1368_s16, %s1778_s16   ;;  %s1321_s15 = sphi %s1366_s15, %s1777_s15  }
   0xb   : > { %s1391_s21 = sadd.s32 1, %s1333_s18   ;;  %s29_s22 = sadd.s32 1, %s1329_s17 }
   0xc   : > { %s26_s23 = ssub.s32 %s1333_s18, %s1391_s21  ;;  %p36_p0 = scmp.ne.s32.totalorder %s1329_s17, %s1325_s16 }
   0xd   : > { %p27_p1 = scmp.eq.s32.totalorder %s26_s23, 0  ;;  %p37_p2 = scmp.eq.s32.totalorder %s1333_s18, 0 }
   0xe   : > { %p42_p3 = scmp.ne.s32.totalorder %s1325_s16, %s1321_s15  ;;  %p43_p4 = scmp.eq.s32.totalorder %s1387_s19, 0 }
   0xf   : > { %s1403_s24 = scalar_select %p27_p1, %s1329_s17, %s29_s22  }
  0x10   : > { %p1405_p5 = por %p37_p2, %p36_p0  ;;  %p1411_p6 = por %p43_p4, %p42_p3 }
  0x11   : > { %p129_p7 = scmp.eq.s32.totalorder %s1387_s19, 1  ;;  %p135_p8 = scmp.eq.s32.totalorder %s959_s20, 1 }
  0x12   : > { %p960_p9 = scmp.ge.s32.totalorder %s1333_s18, 1  ;;  %p142_p10 = scmp.lt.s32.totalorder %s1333_s18, 3 }
  0x13   : > { %p1418_p11 = por %p129_p7, %p36_p0  ;;  %p1422_p12 = por %p135_p8, %p42_p3 }
  0x14   : > { %p1426_p13 = pnand %p960_p9, %p142_p10  ;;  %s1773_s1 = sld [smem:[#allocation15_spill]] }
  0x15   : > { %p1116_p2 = scmp.lt.s32.totalorder %s1333_s18, 2  ;;  %s1774_s2 = sld [smem:[#allocation16_spill]] }
  0x16   : > { %p1099_p1 = pneg %p1426_p13  ;;  %s1335_s11 = smov [#allocation8]  }
  0x17   : > { %p1444_p7 = pnand %p1116_p2, %p1405_p5  ;;  %s178_s12 = sand.u32 1, %s1329_s17  }
  0x18   : > { %p1100_p3 = pnand %p1099_p1, %p43_p4  ;;  %s1336_s13 = smov [#allocation9]  }
  0x19   : > { %s964_s14 = sshll.u32 %s178_s12, 7  ;;  %s1053_s20 = sshll.u32 %s1333_s18, 7 }
  0x1a   : > { %s154_s6 = sshll.u32 %s1773_s1, 4  ;;  %s187_s30 = scalar_lea.hbm %s1761_s0, %s1053_s20  ;;  %s155_s6 = int_to_ptr.hbm [resolvable:$true] %s154_s6 }
  0x1b   : > { %s164_s9 = sshll.u32 %s1774_s2, 4  ;;  %s182_s5 = scalar_lea.vmem [#allocation3], %s964_s14  ;;  %s165_s9 = int_to_ptr.vmem [resolvable:$true] %s164_s9 }
  0x1c   : > { %1102 = dma.hbm_to_smem (!%p1100_p3), %s155_s6, 16, %s1335_s11, [#allocation6]  }
  0x1d   : > { %1105 = dma.vmem_to_smem (!%p1100_p3), %s165_s9, 16, %s1336_s13, [#allocation7]  }
  0x1e   : > { %s190_s7 = sshll.u32 %s182_s5, 4  ;;  %s188_s25 = sshll.u32 %s187_s30, 4  ;;  %s191_s7 = int_to_ptr.vmem [resolvable:$true] %s190_s7  ;;  %s189_s25 = int_to_ptr.hbm [resolvable:$true] %s188_s25 }
  0x1f   : > { %s179_s8 = scalar_lea.sflag [#allocation4], %s178_s12  ;;  %s1229_s1 = sshra.s32 %s189_s25, 4  ;;  %s1230_s1 = int_to_ptr.hbm [resolvable:$true] %s1229_s1 }
  0x20   : > { %s1231_s2 = scalar_lea.hbm %s1230_s1, 128  ;;  %p1233_p8 = pneg %p1444_p7 }
  0x21   : > { %p1232_p5 = scmp.ne.s32.totalorder %s1230_s1, %s1231_s2  ;;  %s1236_s11 = scalar_lea.hbm %s1761_s0, 256 }
  0x22   : > { %p1237_p1 = scmp.lt.s32.totalorder %s1230_s1, %s1761_s0  ;;  %p1238_p2 = scmp.lt.s32.totalorder %s1236_s11, %s1231_s2 }
  0x23   : > { %p1234_p9 = pnand %p1233_p8, %p1232_p5 }
  0x24   : > { %p1239_p3 = por %p1238_p2, %p1237_p1 }
  0x25   : > { %p1235_p10 = pneg %p1234_p9 }
  0x27   : > { %p1240_p0 = pnand %p1239_p3, %p1235_p10 }
  0x29   : > { %1243 = shalt.err (!%p1240_p0)
}
  0x2a   : > { %s1337_s12 = smov 128   ;;  %s1338_s14 = smov 8  }
  0x2b   : > { %1109 = dma.hbm_to_vmem [thread:$0]  (!%p1444_p7), %s189_s25, 2048, %s191_s7, %s179_s8, %s1337_s12, %s1337_s12, %s1338_s14  }
  0x2c   : > { %202 = sbr.rel (%p1426_p13) target bundleno = 1089 (0x441), region = 36  ;;  %s1466_s22 = sand.u32 (!%p1426_p13), 1, %s1325_s16  }
  0x2d   : > { %s968_s1 = sshll.u32 (!%p1426_p13), %s1466_s22, 7  ;;  %s205_s2 = scalar_lea.sflag (!%p1426_p13), [#allocation4], %s1466_s22 }
  0x2e   : > { %s1472_s23 = scalar_lea.vmem (!%p1426_p13), [#allocation3], %s968_s1 }
  0x31   : > { %1304 = dma.done.wait (%p1411_p6), %s205_s2, 2048  }
  0x32   : > { %1306 = vsyncadd (%p1411_p6), %s205_s2, 4294965248 }
  0x33   : > { %1308 = dma.done.wait (%p43_p4), [#allocation6], 16  }
  0x34   : > { %1310 = vsyncadd (%p43_p4), [#allocation6], 4294967280 }
  0x35   : > { %1312 = dma.done.wait (%p43_p4), [#allocation7], 16  }
  0x36   : > { %1314 = vsyncadd (%p43_p4), [#allocation7], 4294967280 }
  0x37   : > { %224 = sfence }
  0x38   : > { %v1487_v0 = vld [vmem:[%s1472_s23] sm:$0xff]  ;;  %v1490_v1 = vld [vmem:[%s1472_s23 + $0x8] sm:$0xff]  ;;  %v1495_v3 = vld [vmem:[%s1472_s23 + $0x10] sm:$0xff]  ;;  %s974_s6 = sld [smem:[#allocation8 + $0x1]] }
  0x39   : > { %v251_v2 = vadd.f32 %v1490_v1, %v1487_v0  ;;  %v1498_v4 = vld [vmem:[%s1472_s23 + $0x18] sm:$0xff]  ;;  %v1503_v20 = vld [vmem:[%s1472_s23 + $0x20] sm:$0xff]  ;;  %v1506_v21 = vld [vmem:[%s1472_s23 + $0x28] sm:$0xff]  ;;  %s975_s13 = sld [smem:[#allocation9 + $0x1]] }
  0x3a   : > { %v266_v5 = vadd.f32 %v1498_v4, %v1495_v3  ;;  %v367_v22 = vadd.f32 %v1506_v21, %v1503_v20  ;;  %v1511_v23 = vld [vmem:[%s1472_s23 + $0x30] sm:$0xff]  ;;  %v1514_v24 = vld [vmem:[%s1472_s23 + $0x38] sm:$0xff]  ;;  %s1575_s20 = sld [smem:[#allocation8 + $0x2]] }
  0x3b   : > { %252 = vadd.xlane.f32.xlu0 %v251_v2  ;;  %v382_v25 = vadd.f32 %v1514_v24, %v1511_v23  ;;  %s1577_s12 = sld [smem:[#allocation8 + $0x3]] }
  0x3c   : > { %368 = vadd.xlane.f32.xlu2 %v367_v22  ;;  %s1580_s14 = sld [smem:[#allocation9 + $0x2]] }
  0x3d   : > { %s1582_s2 = sld [smem:[#allocation9 + $0x3]] }
  0x43   : > { %267 = vadd.xlane.f32.xlu0 %v266_v5 }
  0x44   : > { %383 = vadd.xlane.f32.xlu2 %v382_v25 }
  0xae   : > { %v253_v6 = vpop.xlane.xlu0 %252 }
  0xaf   : > { %v254_v7 = vrot.slane %v253_v6, 4  ;;  %v369_v40 = vpop.xlane.xlu2 %368 }
  0xb0   : > { %v370_v42 = vrot.slane %v369_v40, 4 }
  0xb1   : > { %v255_v8 = vadd.f32 %v254_v7, %v253_v6 }
  0xb2   : > { %v371_v47 = vadd.f32 %v370_v42, %v369_v40 }
  0xb3   : > { %v256_v9 = vrot.slane %v255_v8, 2 }
  0xb4   : > { %v372_v51 = vrot.slane %v371_v47, 2 }
  0xb5   : > { %v257_v10 = vadd.f32 %v256_v9, %v255_v8  ;;  %v1529_v8 = vld [vmem:[%s1472_s23 + $0x40] sm:$0xff]  ;;  %v1532_v9 = vld [vmem:[%s1472_s23 + $0x48] sm:$0xff] }
  0xb6   : > { %v268_v11 = vpop.xlane.xlu0 %267  ;;  %v373_v58 = vadd.f32 %v372_v51, %v371_v47 }
  0xb7   : > { %v269_v12 = vrot.slane %v268_v11, 4  ;;  %v258_v13 = vrot.slane %v257_v10, 1  ;;  %v384_v41 = vpop.xlane.xlu2 %383 }
  0xb8   : > { %v385_v45 = vrot.slane %v384_v41, 4  ;;  %v374_v62 = vrot.slane %v373_v58, 1 }
  0xb9   : > { %v270_v14 = vadd.f32 %v269_v12, %v268_v11  ;;  %v259_v15 = vadd.f32 %v258_v13, %v257_v10  ;;  %v484_v10 = vadd.f32 %v1532_v9, %v1529_v8 }
  0xba   : > { %v386_v49 = vadd.f32 %v385_v45, %v384_v41  ;;  %v375_v6 = vadd.f32 %v374_v62, %v373_v58 }
  0xbb   : > { %v271_v16 = vrot.slane %v270_v14, 2  ;;  %1055 = vpush %v259_v15  ;;  %485 = vadd.xlane.f32.xlu2 %v484_v10  ;;  %v1555_v10 = vld [vmem:[%s1472_s23 + $0x60] sm:$0xff] }
  0xbc   : > { %v387_v53 = vrot.slane %v386_v49, 2 }
  0xbd   : > { %v272_v17 = vadd.f32 %v271_v16, %v270_v14 }
  0xbe   : > { %v388_v60 = vadd.f32 %v387_v53, %v386_v49 }
  0xbf   : > { %v273_v18 = vrot.slane %v272_v17, 1 }
  0xc0   : > { %v389_v2 = vrot.slane %v388_v60, 1 }
  0xc1   : > { %v274_v19 = vadd.f32 %v273_v18, %v272_v17 }
  0xc2   : > { %v390_v7 = vadd.f32 %v389_v2, %v388_v60 }
  0xc3   : > { %1057 = vpush %v274_v19 }
  0xec   : > { %s1056_s26 = spop %1055 }
  0xed   : > { %v261_v26 = vstv %s1056_s26  ;;  %s1003_s26 = sld [smem:[#allocation9 + $0x6]] }
  0xf4   : > { %s1058_s29 = spop %1057 }
  0xf5   : > { %v276_v27 = vstv %s1058_s29  ;;  %s1005_s29 = sld [smem:[#allocation9 + $0x7]] }
  0xf6   : > { %v277_v28 = vadd.f32 %v276_v27, %v261_v26 }
  0xf8   : > { %v1518_v29 = vmul.f32 0.00024414063, %v277_v28 }
  0xfa   : > { %v279_v30 = vsub.f32 %v1487_v0, %v1518_v29  ;;  %v280_v31 = vsub.f32 %v1490_v1, %v1518_v29  ;;  %v295_v35 = vsub.f32 %v1495_v3, %v1518_v29  ;;  %v296_v36 = vsub.f32 %v1498_v4, %v1518_v29 }
  0xfc   : > { %v281_v32 = vmul.f32 %v279_v30, %v279_v30  ;;  %v282_v33 = vmul.f32 %v280_v31, %v280_v31  ;;  %v297_v37 = vmul.f32 %v295_v35, %v295_v35  ;;  %v298_v38 = vmul.f32 %v296_v36, %v296_v36 }
  0xfe   : > { %v283_v34 = vadd.f32 %v282_v33, %v281_v32  ;;  %v299_v39 = vadd.f32 %v298_v38, %v297_v37  ;;  %v1547_v33 = vld [vmem:[%s1472_s23 + $0x50] sm:$0xff] }
 0x100   : > { %284 = vadd.xlane.f32.xlu1 %v283_v34  ;;  %v1550_v34 = vld [vmem:[%s1472_s23 + $0x58] sm:$0xff] }
 0x101   : > { %v499_v35 = vadd.f32 %v1550_v34, %v1547_v33 }
 0x108   : > { %300 = vadd.xlane.f32.xlu1 %v299_v39 }
 0x12e   : > { %v486_v36 = vpop.xlane.xlu2 %485 }
 0x12f   : > { %v487_v37 = vrot.slane %v486_v36, 4 }
 0x131   : > { %v488_v38 = vadd.f32 %v487_v37, %v486_v36 }
 0x133   : > { %v489_v40 = vrot.slane %v488_v38, 2 }
 0x173   : > { %v285_v43 = vpop.xlane.xlu1 %284 }
 0x174   : > { %v286_v44 = vrot.slane %v285_v43, 4 }
 0x176   : > { %v287_v46 = vadd.f32 %v286_v44, %v285_v43 }
 0x178   : > { %v288_v48 = vrot.slane %v287_v46, 2 }
 0x17a   : > { %v289_v50 = vadd.f32 %v288_v48, %v287_v46  ;;  %v490_v46 = vadd.f32 %v489_v40, %v488_v38 }
 0x17b   : > { %v301_v52 = vpop.xlane.xlu1 %300 }
 0x17c   : > { %v302_v54 = vrot.slane %v301_v52, 4  ;;  %v290_v55 = vrot.slane %v289_v50, 1  ;;  %v491_v51 = vrot.slane %v490_v46, 1 }
 0x17e   : > { %v303_v56 = vadd.f32 %v302_v54, %v301_v52  ;;  %v291_v57 = vadd.f32 %v290_v55, %v289_v50 }
 0x180   : > { %v304_v59 = vrot.slane %v303_v56, 2  ;;  %1059 = vpush %v291_v57 }
 0x182   : > { %v305_v61 = vadd.f32 %v304_v59, %v303_v56  ;;  %v492_v59 = vadd.f32 %v491_v51, %v490_v46 }
 0x184   : > { %v306_v63 = vrot.slane %v305_v61, 1 }
 0x186   : > { %v307_v5 = vadd.f32 %v306_v63, %v305_v61 }
 0x188   : > { %1061 = vpush %v307_v5 }
 0x189   : > { %1063 = vpush %v375_v6 }
 0x18a   : > { %1065 = vpush %v390_v7 }
 0x1b1   : > { %s1060_s10 = spop %1059 }
 0x1b2   : > { %v293_v11 = vstv %s1060_s10  ;;  %s1637_s10 = scalar_lea.vmem [#allocation10], %s968_s1 }
 0x1b9   : > { %s1062_s30 = spop %1061 }
 0x1ba   : > { %v309_v12 = vstv %s1062_s30  ;;  %s1064_s5 = spop %1063 }
 0x1bb   : > { %v310_v13 = vadd.f32 %v309_v12, %v293_v11  ;;  %v377_v14 = vstv %s1064_s5  ;;  %s1066_s7 = spop %1065  ;;  %v1558_v11 = vld [vmem:[%s1472_s23 + $0x68] sm:$0xff] }
 0x1bc   : > { %v392_v15 = vstv %s1066_s7 }
 0x1bd   : > { %v393_v16 = vadd.f32 %v392_v15, %v377_v14  ;;  %v311_v2 = vmul.f32 0.00024414063, %v310_v13  ;;  %v601_v14 = vadd.f32 %v1558_v11, %v1555_v10 }
 0x1bf   : > { %v1536_v17 = vmul.f32 0.00024414063, %v393_v16  ;;  %v312_v5 = vadd.f32 1e-05, %v311_v2 }
 0x1c1   : > { %v411_v18 = vsub.f32 %v1511_v23, %v1536_v17  ;;  %v412_v19 = vsub.f32 %v1514_v24, %v1536_v17  ;;  %v395_v22 = vsub.f32 %v1503_v20, %v1536_v17  ;;  %v396_v25 = vsub.f32 %v1506_v21, %v1536_v17 }
 0x1c2   : > { %1159 = vrsqrt.f32 %v312_v5  ;;  %vm319_vm1 = vweird.f32 %v312_v5 }
 0x1c3   : > { %v413_v26 = vmul.f32 %v411_v18, %v411_v18  ;;  %v414_v27 = vmul.f32 %v412_v19, %v412_v19  ;;  %v397_v28 = vmul.f32 %v395_v22, %v395_v22  ;;  %v398_v30 = vmul.f32 %v396_v25, %v396_v25 }
 0x1c5   : > { %v415_v31 = vadd.f32 %v414_v27, %v413_v26  ;;  %v399_v32 = vadd.f32 %v398_v30, %v397_v28 }
 0x1c7   : > { %416 = vadd.xlane.f32.xlu1 %v415_v31  ;;  %400 = vadd.xlane.f32.xlu0 %v399_v32  ;;  %v343_v31 = vstv %s974_s6  ;;  %s993_s6 = sld [smem:[#allocation9 + $0x4]] }
 0x1c8   : > { %v1160_v6 = vpop.eup %1159 }
 0x1c9   : > { %v314_v7 = vmul.f32 %v1160_v6, %v312_v5  ;;  %vm320_vm0 = vweird.f32 %v1160_v6 }
 0x1ca   : > { %vm321_vm2 = vmor %vm319_vm1, %vm320_vm0 }
 0x1cb   : > { %v315_v12 = vmul.f32 %v1160_v6, %v314_v7 }
 0x1cd   : > { %v316_v15 = vmul.f32 0.5, %v315_v12 }
 0x1cf   : > { %500 = vadd.xlane.f32.xlu0 %v499_v35  ;;  %v317_v18 = vsub.f32 1.5, %v316_v15  ;;  %v464_v15 = vstv %s1582_s2  ;;  %s1004_s2 = sld [smem:[#allocation8 + $0x7]] }
 0x1d1   : > { %v318_v25 = vmul.f32 %v1160_v6, %v317_v18 }
 0x1d3   : > { %v1562_v30 = vsel %vm321_vm2, %v1160_v6, %v318_v25 }
 0x1d4   : > { %v344_v36 = vmul.f32 %v343_v31, %v1562_v30 }
 0x1d7   : > { %602 = vadd.xlane.f32.xlu0 %v601_v14  ;;  %v444_v14 = vstv %s1580_s14  ;;  %s1002_s14 = sld [smem:[#allocation8 + $0x6]] }
 0x23a   : > { %v417_v39 = vpop.xlane.xlu1 %416  ;;  %v401_v42 = vpop.xlane.xlu0 %400 }
 0x23b   : > { %v418_v41 = vrot.slane %v417_v39, 4  ;;  %v402_v43 = vrot.slane %v401_v42, 4 }
 0x23d   : > { %v419_v44 = vadd.f32 %v418_v41, %v417_v39  ;;  %v403_v45 = vadd.f32 %v402_v43, %v401_v42 }
 0x23f   : > { %v420_v47 = vrot.slane %v419_v44, 2  ;;  %v404_v48 = vrot.slane %v403_v45, 2 }
 0x241   : > { %v421_v49 = vadd.f32 %v420_v47, %v419_v44  ;;  %v405_v50 = vadd.f32 %v404_v48, %v403_v45  ;;  %v346_v47 = vmul.f32 %v344_v36, %v1518_v29 }
 0x242   : > { %v501_v52 = vpop.xlane.xlu0 %500 }
 0x243   : > { %v422_v53 = vrot.slane %v421_v49, 1  ;;  %v502_v54 = vrot.slane %v501_v52, 4  ;;  %v406_v55 = vrot.slane %v405_v50, 1 }
 0x245   : > { %v423_v56 = vadd.f32 %v422_v53, %v421_v49  ;;  %v503_v57 = vadd.f32 %v502_v54, %v501_v52  ;;  %v407_v58 = vadd.f32 %v406_v55, %v405_v50  ;;  %v347_v50 = vstv %s975_s13 }
 0x246   : > { %v348_v53 = vsub.f32 %v347_v50, %v346_v47  ;;  %v351_v55 = vmul.f32 %v1495_v3, %v344_v36 }
 0x247   : > { %v504_v60 = vrot.slane %v503_v57, 2  ;;  %1067 = vpush %v407_v58 }
 0x248   : > { %1069 = vpush %v423_v56  ;;  %v1586_v56 = vld [vmem:[%s1472_s23 + $0x70] sm:$0xff]  ;;  %v353_v2 = vadd.f32 %v351_v55, %v348_v53 }
 0x249   : > { %1071 = vpush %v492_v59  ;;  %v505_v61 = vadd.f32 %v504_v60, %v503_v57  ;;  %v1589_v57 = vld [vmem:[%s1472_s23 + $0x78] sm:$0xff]  ;;  %v440_v59 = vstv %s1575_s20  ;;  %v460_v60 = vstv %s1577_s12  ;;  %s326_s12 = sld [smem:[#allocation9]] }
 0x24b   : > { %v506_v62 = vrot.slane %v505_v61, 1 }
 0x24d   : > { %v507_v63 = vadd.f32 %v506_v62, %v505_v61  ;;  %v616_v61 = vadd.f32 %v1589_v57, %v1586_v56  ;;  %v1598_v62 = vld [vmem:[%s1764_s3] ss:$0 sm:$0xff] }
 0x24f   : > { %1073 = vpush %v507_v63  ;;  %v352_v63 = vmul.f32 %v1498_v4, %v344_v36 }
 0x251   : > { %v354_v12 = vadd.f32 %v352_v63, %v348_v53 }
 0x253   : > { %v356_v31 = vmul.f32 %v1598_v62, %v354_v12 }
 0x278   : > { %s1068_s25 = spop %1067 }
 0x279   : > { %v409_v16 = vstv %s1068_s25  ;;  %s1070_s8 = spop %1069  ;;  %s992_s25 = sld [smem:[#allocation8 + $0x4]] }
 0x27a   : > { %v425_v13 = vstv %s1070_s8  ;;  %s1072_s9 = spop %1071  ;;  %s994_s8 = sld [smem:[#allocation8 + $0x5]] }
 0x27b   : > { %v426_v19 = vadd.f32 %v425_v13, %v409_v16  ;;  %v494_v27 = vstv %s1072_s9  ;;  %v355_v13 = vmul.f32 %v1598_v62, %v353_v2  ;;  %s995_s9 = sld [smem:[#allocation9 + $0x5]] }
 0x27d   : > { %v427_v22 = vmul.f32 0.00024414063, %v426_v19 }
 0x27f   : > { %v428_v26 = vadd.f32 1e-05, %v427_v22 }
 0x280   : > { %s1074_s11 = spop %1073 }
 0x281   : > { %1161 = vrsqrt.f32 %v428_v26  ;;  %v509_v28 = vstv %s1074_s11  ;;  %vm435_vm4 = vweird.f32 %v428_v26  ;;  %s323_s11 = sld [smem:[#allocation8]] }
 0x282   : > { %v510_v32 = vadd.f32 %v509_v28, %v494_v27  ;;  %1163 = vtanh.f32 %v355_v13 }
 0x283   : > { %1165 = vtanh.f32 %v356_v31 }
 0x284   : > { %v1564_v35 = vmul.f32 0.00024414063, %v510_v32 }
 0x286   : > { %v528_v37 = vsub.f32 %v1547_v33, %v1564_v35  ;;  %v529_v38 = vsub.f32 %v1550_v34, %v1564_v35  ;;  %v512_v39 = vsub.f32 %v1529_v8, %v1564_v35  ;;  %v513_v40 = vsub.f32 %v1532_v9, %v1564_v35 }
 0x287   : > { %v1162_v41 = vpop.eup %1161 }
 0x288   : > { %v430_v42 = vmul.f32 %v1162_v41, %v428_v26  ;;  %v530_v43 = vmul.f32 %v528_v37, %v528_v37  ;;  %v531_v44 = vmul.f32 %v529_v38, %v529_v38  ;;  %v514_v45 = vmul.f32 %v512_v39, %v512_v39 }
 0x289   : > { %v515_v46 = vmul.f32 %v513_v40, %v513_v40  ;;  %vm436_vm3 = vweird.f32 %v1162_v41 }
 0x28a   : > { %v431_v48 = vmul.f32 %v1162_v41, %v430_v42  ;;  %v532_v49 = vadd.f32 %v531_v44, %v530_v43  ;;  %vm437_vm5 = vmor %vm435_vm4, %vm436_vm3  ;;  %v1164_v42 = vpop.eup %1163 }
 0x28b   : > { %v516_v51 = vadd.f32 %v515_v46, %v514_v45  ;;  %v1166_v43 = vpop.eup %1165  ;;  %v1615_v46 = vadd.f32 1.0, %v1164_v42 }
 0x28c   : > { %v432_v52 = vmul.f32 0.5, %v431_v48  ;;  %533 = vadd.xlane.f32.xlu2 %v532_v49  ;;  %v1619_v49 = vadd.f32 1.0, %v1166_v43 }
 0x28d   : > { %517 = vadd.xlane.f32.xlu1 %v516_v51 }
 0x28e   : > { %v433_v54 = vsub.f32 1.5, %v432_v52 }
 0x290   : > { %v434_v58 = vmul.f32 %v1162_v41, %v433_v54 }
 0x292   : > { %v438_v5 = vsel %vm437_vm5, %v1162_v41, %v434_v58  ;;  %v773_v58 = vmul.f32 %v1555_v10, %v1615_v46 }
 0x293   : > { %v441_v6 = vmul.f32 %v440_v59, %v438_v5  ;;  %v461_v7 = vmul.f32 %v460_v60, %v438_v5 }
 0x295   : > { %v443_v16 = vmul.f32 %v441_v6, %v1536_v17  ;;  %v463_v18 = vmul.f32 %v461_v7, %v1536_v17  ;;  %617 = vadd.xlane.f32.xlu1 %v616_v61  ;;  %v446_v19 = vmul.f32 %v1503_v20, %v441_v6  ;;  %v447_v22 = vmul.f32 %v1506_v21, %v441_v6 }
 0x296   : > { %v468_v27 = vmul.f32 %v1511_v23, %v461_v7  ;;  %v469_v28 = vmul.f32 %v1514_v24, %v461_v7  ;;  %v774_v61 = vmul.f32 %v1558_v11, %v1619_v49 }
 0x297   : > { %v445_v25 = vsub.f32 %v444_v14, %v443_v16  ;;  %v465_v26 = vsub.f32 %v464_v15, %v463_v18  ;;  %v603_v14 = vpop.xlane.xlu0 %602 }
 0x298   : > { %v604_v15 = vrot.slane %v603_v14, 4 }
 0x299   : > { %v448_v32 = vadd.f32 %v446_v19, %v445_v25  ;;  %v449_v36 = vadd.f32 %v447_v22, %v445_v25  ;;  %v470_v37 = vadd.f32 %v468_v27, %v465_v26  ;;  %v471_v38 = vadd.f32 %v469_v28, %v465_v26 }
 0x29a   : > { %v605_v16 = vadd.f32 %v604_v15, %v603_v14 }
 0x29b   : > { %v450_v17 = vmul.f32 %v1598_v62, %v448_v32  ;;  %v451_v39 = vmul.f32 %v1598_v62, %v449_v36  ;;  %v472_v40 = vmul.f32 %v1598_v62, %v470_v37  ;;  %v473_v41 = vmul.f32 %v1598_v62, %v471_v38 }
 0x29c   : > { %v606_v13 = vrot.slane %v605_v16, 2 }
 0x29d   : > { %1167 = vtanh.f32 %v450_v17 }
 0x29e   : > { %1169 = vtanh.f32 %v451_v39  ;;  %v607_v28 = vadd.f32 %v606_v13, %v605_v16 }
 0x29f   : > { %1171 = vtanh.f32 %v472_v40 }
 0x2a0   : > { %1173 = vtanh.f32 %v473_v41  ;;  %v608_v38 = vrot.slane %v607_v28, 1 }
 0x2a3   : > { %v1168_v44 = vpop.eup %1167 }
 0x2a4   : > { %v1170_v45 = vpop.eup %1169  ;;  %v1617_v47 = vadd.f32 1.0, %v1168_v44 }
 0x2a5   : > { %v1172_v48 = vpop.eup %1171  ;;  %v1621_v50 = vadd.f32 1.0, %v1170_v45  ;;  %v609_v45 = vadd.f32 %v608_v38, %v607_v28 }
 0x2a6   : > { %v1174_v51 = vpop.eup %1173  ;;  %v476_v52 = vadd.f32 1.0, %v1172_v48  ;;  %v752_v53 = vmul.f32 %v1503_v20, %v1617_v47 }
 0x2a7   : > { %v477_v54 = vadd.f32 1.0, %v1174_v51  ;;  %v753_v55 = vmul.f32 %v1506_v21, %v1621_v50 }
 0x2a8   : > { %v756_v59 = vmul.f32 %v1529_v8, %v476_v52  ;;  %v769_v60 = vmul.f32 %v1511_v23, %v476_v52 }
 0x2a9   : > { %v757_v63 = vmul.f32 %v1532_v9, %v477_v54  ;;  %v770_v2 = vmul.f32 %v1514_v24, %v477_v54 }
 0x2aa   : > { %v758_v5 = vadd.f32 %v756_v59, %v752_v53  ;;  %v775_v6 = vadd.f32 %v773_v58, %v769_v60 }
 0x2ab   : > { %v759_v7 = vadd.f32 %v757_v63, %v753_v55  ;;  %v776_v12 = vadd.f32 %v774_v61, %v770_v2 }
 0x2ac   : > { %1018 = vst [vmem:[%s1637_s10 + $0x20] sm:$0xff] %v758_v5 }
 0x2ad   : > { %1019 = vst [vmem:[%s1637_s10 + $0x28] sm:$0xff] %v759_v7 }
 0x2ae   : > { %1024 = vst [vmem:[%s1637_s10 + $0x30] sm:$0xff] %v775_v6 }
 0x2af   : > { %1025 = vst [vmem:[%s1637_s10 + $0x38] sm:$0xff] %v776_v12 }
 0x2ff   : > { %v534_v18 = vpop.xlane.xlu2 %533 }
 0x300   : > { %v535_v19 = vrot.slane %v534_v18, 4  ;;  %v518_v22 = vpop.xlane.xlu1 %517 }
 0x301   : > { %v519_v25 = vrot.slane %v518_v22, 4 }
 0x302   : > { %v536_v26 = vadd.f32 %v535_v19, %v534_v18 }
 0x303   : > { %v520_v27 = vadd.f32 %v519_v25, %v518_v22 }
 0x304   : > { %v537_v31 = vrot.slane %v536_v26, 2 }
 0x305   : > { %v521_v32 = vrot.slane %v520_v27, 2 }
 0x306   : > { %v538_v36 = vadd.f32 %v537_v31, %v536_v26 }
 0x307   : > { %v522_v37 = vadd.f32 %v521_v32, %v520_v27 }
 0x308   : > { %v618_v17 = vpop.xlane.xlu1 %617  ;;  %v539_v39 = vrot.slane %v538_v36, 1 }
 0x309   : > { %v619_v40 = vrot.slane %v618_v17, 4  ;;  %v523_v41 = vrot.slane %v522_v37, 1 }
 0x30a   : > { %v540_v42 = vadd.f32 %v539_v39, %v538_v36  ;;  %v557_v36 = vstv %s992_s25  ;;  %s847_s25 = scalar_lea.sflag [#allocation5], %s1466_s22 }
 0x30b   : > { %v620_v43 = vadd.f32 %v619_v40, %v618_v17  ;;  %v524_v44 = vadd.f32 %v523_v41, %v522_v37  ;;  %v577_v37 = vstv %s994_s8  ;;  %v561_v40 = vstv %s993_s6 }
 0x30c   : > { %v581_v41 = vstv %s995_s9 }
 0x30d   : > { %v621_v48 = vrot.slane %v620_v43, 2  ;;  %1075 = vpush %v524_v44 }
 0x30e   : > { %1077 = vpush %v540_v42 }
 0x30f   : > { %v622_v51 = vadd.f32 %v621_v48, %v620_v43  ;;  %1079 = vpush %v609_v45 }
 0x311   : > { %v623_v52 = vrot.slane %v622_v51, 1 }
 0x313   : > { %v624_v53 = vadd.f32 %v623_v52, %v622_v51 }
 0x315   : > { %1081 = vpush %v624_v53 }
 0x33e   : > { %s1076_s1 = spop %1075 }
 0x33f   : > { %v526_v54 = vstv %s1076_s1  ;;  %s1078_s30 = spop %1077  ;;  %s1054_s1 = sshll.u32 %s1387_s19, 7 }
 0x340   : > { %v542_v55 = vstv %s1078_s30  ;;  %s1080_s5 = spop %1079  ;;  %s858_s30 = scalar_lea.hbm %s1765_s4, %s1054_s1 }
 0x341   : > { %v543_v58 = vadd.f32 %v542_v55, %v526_v54  ;;  %v611_v61 = vstv %s1080_s5  ;;  %s859_s5 = sshll.u32 %s1637_s10, 4  ;;  %s860_s5 = int_to_ptr.vmem [resolvable:$true] %s859_s5 }
 0x343   : > { %v544_v59 = vmul.f32 0.00024414063, %v543_v58 }
 0x345   : > { %v545_v60 = vadd.f32 1e-05, %v544_v59 }
 0x346   : > { %s1082_s7 = spop %1081 }
 0x347   : > { %1175 = vrsqrt.f32 %v545_v60  ;;  %v626_v63 = vstv %s1082_s7  ;;  %vm552_vm7 = vweird.f32 %v545_v60  ;;  %s861_s7 = sshll.u32 %s858_s30, 4  ;;  %s862_s7 = int_to_ptr.hbm [resolvable:$true] %s861_s7 }
 0x348   : > { %v627_v2 = vadd.f32 %v626_v63, %v611_v61  ;;  %s1273_s8 = sshra.s32 %s862_s7, 4  ;;  %s1274_s8 = int_to_ptr.hbm [resolvable:$true] %s1273_s8 }
 0x349   : > { %s1275_s6 = scalar_lea.hbm %s1274_s8, 128  ;;  %p1280_p0 = scmp.lt.s32.totalorder %s1274_s8, %s1765_s4 }
 0x34a   : > { %v1643_v5 = vmul.f32 0.00024414063, %v627_v2  ;;  %p1276_p4 = scmp.ne.s32.totalorder %s1274_s8, %s1275_s6 }
 0x34c   : > { %v645_v6 = vsub.f32 %v1586_v56, %v1643_v5  ;;  %v646_v7 = vsub.f32 %v1589_v57, %v1643_v5  ;;  %v629_v12 = vsub.f32 %v1555_v10, %v1643_v5  ;;  %v630_v14 = vsub.f32 %v1558_v11, %v1643_v5  ;;  %p1277_p6 = pnand %p1276_p4, %p1418_p11 }
 0x34d   : > { %v1176_v15 = vpop.eup %1175 }
 0x34e   : > { %v547_v16 = vmul.f32 %v1176_v15, %v545_v60  ;;  %v647_v18 = vmul.f32 %v645_v6, %v645_v6  ;;  %v648_v13 = vmul.f32 %v646_v7, %v646_v7  ;;  %v631_v19 = vmul.f32 %v629_v12, %v629_v12  ;;  %p1278_p13 = pneg %p1277_p6 }
 0x34f   : > { %v632_v22 = vmul.f32 %v630_v14, %v630_v14  ;;  %vm553_vm6 = vweird.f32 %v1176_v15 }
 0x350   : > { %v548_v25 = vmul.f32 %v1176_v15, %v547_v16  ;;  %v649_v26 = vadd.f32 %v648_v13, %v647_v18  ;;  %vm554_vm8 = vmor %vm552_vm7, %vm553_vm6 }
 0x351   : > { %v633_v27 = vadd.f32 %v632_v22, %v631_v19  ;;  %v735_v22 = vmul.f32 %v1495_v3, %v1615_v46 }
 0x352   : > { %v549_v28 = vmul.f32 0.5, %v548_v25  ;;  %650 = vadd.xlane.f32.xlu0 %v649_v26 }
 0x353   : > { %634 = vadd.xlane.f32.xlu2 %v633_v27  ;;  %v736_v27 = vmul.f32 %v1498_v4, %v1619_v49 }
 0x354   : > { %v550_v31 = vsub.f32 1.5, %v549_v28 }
 0x356   : > { %v551_v32 = vmul.f32 %v1176_v15, %v550_v31 }
 0x358   : > { %v555_v38 = vsel %vm554_vm8, %v1176_v15, %v551_v32 }
 0x359   : > { %v558_v17 = vmul.f32 %v557_v36, %v555_v38  ;;  %v578_v39 = vmul.f32 %v577_v37, %v555_v38 }
 0x35b   : > { %v560_v42 = vmul.f32 %v558_v17, %v1564_v35  ;;  %v580_v43 = vmul.f32 %v578_v39, %v1564_v35  ;;  %v563_v44 = vmul.f32 %v1529_v8, %v558_v17  ;;  %v564_v45 = vmul.f32 %v1532_v9, %v558_v17 }
 0x35c   : > { %v585_v52 = vmul.f32 %v1547_v33, %v578_v39  ;;  %v586_v53 = vmul.f32 %v1550_v34, %v578_v39 }
 0x35d   : > { %v562_v48 = vsub.f32 %v561_v40, %v560_v42  ;;  %v582_v51 = vsub.f32 %v581_v41, %v580_v43 }
 0x35f   : > { %v565_v54 = vadd.f32 %v563_v44, %v562_v48  ;;  %v566_v55 = vadd.f32 %v564_v45, %v562_v48  ;;  %v587_v58 = vadd.f32 %v585_v52, %v582_v51  ;;  %v588_v59 = vadd.f32 %v586_v53, %v582_v51 }
 0x360   : > { %v324_v52 = vstv %s323_s11 }
 0x361   : > { %v567_v60 = vmul.f32 %v1598_v62, %v565_v54  ;;  %v568_v61 = vmul.f32 %v1598_v62, %v566_v55  ;;  %v589_v35 = vmul.f32 %v1598_v62, %v587_v58  ;;  %v590_v63 = vmul.f32 %v1598_v62, %v588_v59 }
 0x362   : > { %v325_v54 = vmul.f32 %v324_v52, %v1562_v30  ;;  %v328_v59 = vstv %s326_s12  ;;  %v1029_v52 = vld [vmem:[%s1472_s23 + $0x18] sm:$0xff] }
 0x363   : > { %1177 = vtanh.f32 %v567_v60 }
 0x364   : > { %1179 = vtanh.f32 %v568_v61  ;;  %v327_v55 = vmul.f32 %v325_v54, %v1518_v29  ;;  %v674_v29 = vstv %s1002_s14 }
 0x365   : > { %1181 = vtanh.f32 %v589_v35 }
 0x366   : > { %1183 = vtanh.f32 %v590_v63  ;;  %v329_v61 = vsub.f32 %v328_v59, %v327_v55  ;;  %v330_v63 = vmul.f32 %v325_v54, %v1487_v0 }
 0x369   : > { %v1178_v2 = vpop.eup %1177 }
 0x36a   : > { %v1180_v6 = vpop.eup %1179  ;;  %v1663_v7 = vadd.f32 1.0, %v1178_v2 }
 0x36b   : > { %v1182_v12 = vpop.eup %1181  ;;  %v1665_v14 = vadd.f32 1.0, %v1180_v6  ;;  %v331_v6 = vmul.f32 %v325_v54, %v1490_v1 }
 0x36c   : > { %v1184_v15 = vpop.eup %1183  ;;  %v593_v16 = vadd.f32 1.0, %v1182_v12  ;;  %v807_v18 = vmul.f32 %v1511_v23, %v1663_v7  ;;  %v332_v12 = vadd.f32 %v330_v63, %v329_v61  ;;  %v786_v59 = vmul.f32 %v1529_v8, %v1663_v7 }
 0x36d   : > { %v594_v13 = vadd.f32 1.0, %v1184_v15  ;;  %v808_v19 = vmul.f32 %v1514_v24, %v1665_v14  ;;  %v333_v30 = vadd.f32 %v331_v6, %v329_v61  ;;  %v787_v63 = vmul.f32 %v1532_v9, %v1665_v14 }
 0x36e   : > { %v739_v25 = vmul.f32 %v1503_v20, %v593_v16  ;;  %v803_v26 = vmul.f32 %v1547_v33, %v593_v16  ;;  %v825_v9 = vmul.f32 %v1550_v34, %v1621_v50 }
 0x36f   : > { %v740_v28 = vmul.f32 %v1506_v21, %v594_v13  ;;  %v804_v31 = vmul.f32 %v1550_v34, %v594_v13  ;;  %v334_v13 = vmul.f32 %v1598_v62, %v332_v12 }
 0x370   : > { %v741_v23 = vadd.f32 %v739_v25, %v735_v22  ;;  %v809_v32 = vadd.f32 %v807_v18, %v803_v26  ;;  %v694_v18 = vstv %s1004_s2  ;;  %v335_v26 = vmul.f32 %v1598_v62, %v333_v30 }
 0x371   : > { %v742_v36 = vadd.f32 %v740_v28, %v736_v27  ;;  %v810_v37 = vadd.f32 %v808_v19, %v804_v31  ;;  %v678_v27 = vstv %s1003_s26  ;;  %v698_v28 = vstv %s1005_s29 }
 0x372   : > { %1012 = vst [vmem:[%s1637_s10 + $0x10] sm:$0xff] %v741_v23 }
 0x373   : > { %1013 = vst [vmem:[%s1637_s10 + $0x18] sm:$0xff] %v742_v36 }
 0x374   : > { %1036 = vst [vmem:[%s1637_s10 + $0x50] sm:$0xff] %v809_v32 }
 0x375   : > { %1037 = vst [vmem:[%s1637_s10 + $0x58] sm:$0xff] %v810_v37 }
 0x3c5   : > { %v651_v3 = vpop.xlane.xlu0 %650 }
 0x3c6   : > { %v652_v24 = vrot.slane %v651_v3, 4  ;;  %v635_v20 = vpop.xlane.xlu2 %634 }
 0x3c7   : > { %v636_v46 = vrot.slane %v635_v20, 4 }
 0x3c8   : > { %v653_v38 = vadd.f32 %v652_v24, %v651_v3 }
 0x3c9   : > { %v637_v17 = vadd.f32 %v636_v46, %v635_v20 }
 0x3ca   : > { %v654_v39 = vrot.slane %v653_v38, 2 }
 0x3cb   : > { %v638_v4 = vrot.slane %v637_v17, 2 }
 0x3cc   : > { %v655_v49 = vadd.f32 %v654_v39, %v653_v38 }
 0x3cd   : > { %v639_v21 = vadd.f32 %v638_v4, %v637_v17 }
 0x3ce   : > { %v656_v40 = vrot.slane %v655_v49, 1 }
 0x3cf   : > { %v640_v41 = vrot.slane %v639_v21, 1 }
 0x3d0   : > { %v657_v42 = vadd.f32 %v656_v40, %v655_v49 }
 0x3d1   : > { %v641_v43 = vadd.f32 %v640_v41, %v639_v21 }
 0x3d3   : > { %1083 = vpush %v641_v43 }
 0x3d4   : > { %1085 = vpush %v657_v42 }
 0x404   : > { %s1084_s13 = spop %1083 }
 0x405   : > { %v643_v44 = vstv %s1084_s13  ;;  %s1086_s20 = spop %1085  ;;  %s1279_s13 = scalar_lea.hbm %s1765_s4, 256 }
 0x406   : > { %v659_v45 = vstv %s1086_s20  ;;  %p1281_p7 = scmp.lt.s32.totalorder %s1279_s13, %s1275_s6 }
 0x407   : > { %v660_v48 = vadd.f32 %v659_v45, %v643_v44  ;;  %v1028_v45 = vld [vmem:[%s1472_s23 + $0x10] sm:$0xff] }
 0x408   : > { %p1282_p5 = por %p1281_p7, %p1280_p0 }
 0x409   : > { %v661_v51 = vmul.f32 0.00024414063, %v660_v48 }
 0x40a   : > { %p1283_p8 = pnand %p1282_p5, %p1278_p13 }
 0x40b   : > { %v662_v53 = vadd.f32 1e-05, %v661_v51 }
 0x40d   : > { %1185 = vrsqrt.f32 %v662_v53  ;;  %vm669_vm10 = vweird.f32 %v662_v53 }
 0x40e   : > { %1187 = vtanh.f32 %v334_v13 }
 0x40f   : > { %1189 = vtanh.f32 %v335_v26 }
 0x413   : > { %v1186_v58 = vpop.eup %1185 }
 0x414   : > { %v664_v60 = vmul.f32 %v1186_v58, %v662_v53  ;;  %vm670_vm9 = vweird.f32 %v1186_v58  ;;  %v1188_v21 = vpop.eup %1187 }
 0x415   : > { %vm671_vm11 = vmor %vm669_vm10, %vm670_vm9  ;;  %v1190_v41 = vpop.eup %1189  ;;  %v338_v42 = vadd.f32 1.0, %v1188_v21 }
 0x416   : > { %v665_v35 = vmul.f32 %v1186_v58, %v664_v60  ;;  %v339_v43 = vadd.f32 1.0, %v1190_v41 }
 0x417   : > { %v719_v54 = vmul.f32 %v338_v42, %v1487_v0 }
 0x418   : > { %v666_v2 = vmul.f32 0.5, %v665_v35  ;;  %v720_v55 = vmul.f32 %v339_v43, %v1490_v1 }
 0x41a   : > { %v667_v15 = vsub.f32 1.5, %v666_v2 }
 0x41c   : > { %v668_v16 = vmul.f32 %v1186_v58, %v667_v15  ;;  %v824_v15 = vmul.f32 %v1547_v33, %v1617_v47 }
 0x41e   : > { %v672_v19 = vsel %vm671_vm11, %v1186_v58, %v668_v16  ;;  %v840_v16 = vmul.f32 %v1589_v57, %v339_v43 }
 0x41f   : > { %v675_v22 = vmul.f32 %v674_v29, %v672_v19  ;;  %v695_v25 = vmul.f32 %v694_v18, %v672_v19 }
 0x421   : > { %v677_v31 = vmul.f32 %v675_v22, %v1643_v5  ;;  %v697_v23 = vmul.f32 %v695_v25, %v1643_v5  ;;  %v680_v32 = vmul.f32 %v1555_v10, %v675_v22  ;;  %v681_v36 = vmul.f32 %v1558_v11, %v675_v22 }
 0x422   : > { %v702_v24 = vmul.f32 %v1586_v56, %v695_v25  ;;  %v703_v20 = vmul.f32 %v1589_v57, %v695_v25 }
 0x423   : > { %v679_v37 = vsub.f32 %v678_v27, %v677_v31  ;;  %v699_v3 = vsub.f32 %v698_v28, %v697_v23 }
 0x425   : > { %v682_v46 = vadd.f32 %v680_v32, %v679_v37  ;;  %v683_v38 = vadd.f32 %v681_v36, %v679_v37  ;;  %v704_v17 = vadd.f32 %v702_v24, %v699_v3  ;;  %v705_v39 = vadd.f32 %v703_v20, %v699_v3 }
 0x427   : > { %v684_v4 = vmul.f32 %v1598_v62, %v682_v46  ;;  %v685_v5 = vmul.f32 %v1598_v62, %v683_v38  ;;  %v706_v49 = vmul.f32 %v1598_v62, %v704_v17  ;;  %v707_v40 = vmul.f32 %v1598_v62, %v705_v39 }
 0x429   : > { %1191 = vtanh.f32 %v684_v4 }
 0x42a   : > { %1193 = vtanh.f32 %v685_v5 }
 0x42b   : > { %1195 = vtanh.f32 %v706_v49 }
 0x42c   : > { %1197 = vtanh.f32 %v707_v40 }
 0x42f   : > { %v1192_v44 = vpop.eup %1191 }
 0x430   : > { %v1194_v48 = vpop.eup %1193  ;;  %v688_v51 = vadd.f32 1.0, %v1192_v44 }
 0x431   : > { %v1196_v53 = vpop.eup %1195  ;;  %v689_v58 = vadd.f32 1.0, %v1194_v48 }
 0x432   : > { %v1198_v62 = vpop.eup %1197  ;;  %v710_v60 = vadd.f32 1.0, %v1196_v53  ;;  %v790_v61 = vmul.f32 %v1028_v45, %v688_v51  ;;  %v820_v35 = vmul.f32 %v1555_v10, %v688_v51 }
 0x433   : > { %v711_v2 = vadd.f32 1.0, %v1198_v62  ;;  %v791_v6 = vmul.f32 %v1029_v52, %v689_v58  ;;  %v821_v12 = vmul.f32 %v1558_v11, %v689_v58 }
 0x434   : > { %v723_v30 = vmul.f32 %v710_v60, %v1487_v0  ;;  %v792_v8 = vadd.f32 %v790_v61, %v786_v59  ;;  %v835_v7 = vmul.f32 %v1586_v56, %v710_v60  ;;  %v839_v0 = vmul.f32 %v1586_v56, %v338_v42 }
 0x435   : > { %v724_v10 = vmul.f32 %v711_v2, %v1490_v1  ;;  %v793_v11 = vadd.f32 %v791_v6, %v787_v63  ;;  %v836_v33 = vmul.f32 %v1589_v57, %v711_v2  ;;  %v826_v14 = vadd.f32 %v824_v15, %v820_v35 }
 0x436   : > { %v725_v47 = vadd.f32 %v723_v30, %v719_v54  ;;  %1030 = vst [vmem:[%s1637_s10 + $0x40] sm:$0xff] %v792_v8  ;;  %v827_v34 = vadd.f32 %v825_v9, %v821_v12  ;;  %v841_v1 = vadd.f32 %v839_v0, %v835_v7 }
 0x437   : > { %v726_v29 = vadd.f32 %v724_v10, %v720_v55  ;;  %1031 = vst [vmem:[%s1637_s10 + $0x48] sm:$0xff] %v793_v11  ;;  %v842_v50 = vadd.f32 %v840_v16, %v836_v33 }
 0x438   : > { %727 = vst [vmem:[%s1637_s10] sm:$0xff] %v725_v47 }
 0x439   : > { %728 = vst [vmem:[%s1637_s10 + $0x8] sm:$0xff] %v726_v29 }
 0x43a   : > { %1042 = vst [vmem:[%s1637_s10 + $0x60] sm:$0xff] %v826_v14 }
 0x43b   : > { %1043 = vst [vmem:[%s1637_s10 + $0x68] sm:$0xff] %v827_v34 }
 0x43c   : > { %1046 = vst [vmem:[%s1637_s10 + $0x70] sm:$0xff] %v841_v1 }
 0x43d   : > { %1047 = vst [vmem:[%s1637_s10 + $0x78] sm:$0xff] %v842_v50 }
 0x43e   : > { %1286 = shalt.err (!%p1283_p8)
}
 0x43f   : > { %s1339_s22 = smov 128   ;;  %s1340_s10 = smov 8  }
 0x440   : > { %1097 = dma.vmem_to_hbm [thread:$0]  (%p1418_p11), %s860_s5, 2048, %s862_s7, %s847_s25, %s1339_s22, %s1339_s22, %s1340_s10  }
 0x441 PF: > { %s876_s14 = sand.u32 1, %s1321_s15   ;;  %p1776_p9 = scmp.ge.s32.totalorder %s1333_s18, 2 }
 0x442   : > { %s877_s2 = scalar_lea.sflag [#allocation5], %s876_s14 }
 0x443   : > { %p1111_p10 = pnand %p1776_p9, %p1422_p12 }
 0x445   : > { %p1112_p1 = pneg %p1111_p10 }
 0x447   : > { %1316 = dma.done.wait (%p1112_p1), %s877_s2, 2048  }
 0x448   : > { %1318 = vsyncadd (%p1112_p1), %s877_s2, 4294965248  ;;  %p19_p2 = scmp.ge.s32.totalorder %s1391_s21, 4   ;;  %s1777_s15 = smov %s1325_s16 }
 0x449   : > { %s1778_s16 = smov %s1329_s17  ;;  %s1779_s17 = smov %s1403_s24 }
 0x44a   : > { %s1780_s18 = smov %s1391_s21  ;;  %21 = sbr.rel (!%p19_p2) target bundleno = 10 (0xa), region = 112 }
 0x44f   :  { %883 = vsyncpa [#allocation4], 1 }
 0x450   :  { %885 = vsyncpa [#allocation4 + $0x1], 1 }
 0x451   :  { %886 = vsyncpa [#allocation5], 1 }
 0x452   :  { %888 = vsyncpa [#allocation5 + $0x1], 1 }
 0x453   :  { %889 = vsyncpa [#allocation6], 1 }
 0x454   :  { %891 = vsyncpa [#allocation6 + $0x1], 1 }
 0x455   :  { %892 = vsyncpa [#allocation7], 1 }
 0x456   :  { %894 = vsyncpa [#allocation7 + $0x1], 1 }

</bundles_post_ra>
